<compile_context>
chip_gen: v7x
topology: tpu7x:2x2x1
jax: 0.10.0
libtpu: 0.0.40
codegen_flags: <defaults>
</compile_context>

<pallas_src>
from typing import NamedTuple

import jax
import jax.numpy as jnp
from jax.experimental import pallas as pl
from jax.experimental.pallas import tpu as pltpu


class EncoderParams(NamedTuple):
    emb: jax.Array          # (V, Hp) f32, columns zero-padded H -> Hp
    wih: jax.Array          # (Hp, 3*Hp) bf16, gate-fused columns (r, z, n)
    whh: jax.Array          # (Hp, 3*Hp) bf16
    bih: jax.Array          # (1, 3*Hp) f32
    bhh: jax.Array          # (1, 3*Hp) f32
    hidden_size: int        # real (unpadded) H


def _round_up(n, m):
    return ((n + m - 1) // m) * m


def encoder_gru_kernel(h0_ref, xseq_ref, wih_ref, whh_ref, bih_ref, bhh_ref,
                       out_ref, gi_ref):
    """Whole-sequence GRU in one kernel invocation (PyTorch nn.GRU semantics):
       r = sigmoid(W_ir x + b_ir + W_hr h + b_hr)
       z = sigmoid(W_iz x + b_iz + W_hz h + b_hz)
       n = tanh  (W_in x + b_in + r * (W_hn h + b_hn))
       h' = (1 - z) * n + z * h
    Gate-fused weights: columns [0:H]=r, [H:2H]=z, [2H:3H]=n (H = padded H).
    """
    T = gi_ref.shape[0]
    Hp = h0_ref.shape[-1]

    # Prologue (runs once): hoisted input projection for ALL time steps,
    # a single (T,Hp)@(Hp,3Hp) MXU matmul with the input bias folded in.
    gi_ref[...] = (
        jnp.dot(xseq_ref[...].astype(wih_ref.dtype), wih_ref[...],
                preferred_element_type=jnp.float32)
        + bih_ref[...])

    def step(t, h):                                   # h: (1, Hp) f32 carry
        gi = gi_ref[pl.ds(t, 1), :]                   # (1, 3Hp) precomputed
        gh = jnp.dot(h.astype(whh_ref.dtype), whh_ref[...],
                     preferred_element_type=jnp.float32) + bhh_ref[...]
        rz = jax.nn.sigmoid(gi[:, :2 * Hp] + gh[:, :2 * Hp])   # fused r|z slab
        r = rz[:, :Hp]
        z = rz[:, Hp:]
        n = jnp.tanh(gi[:, 2 * Hp:] + r * gh[:, 2 * Hp:])
        h_new = (1.0 - z) * n + z * h
        # Store to the VMEM-resident output block; off the serial critical path.
        out_ref[pl.ds(t, 1), :] = h_new
        return h_new

    jax.lax.fori_loop(0, T, step, h0_ref[...], unroll=(T <= 32))


def encoder_rnn_sequence(tokens, h0, params):
    """Run the encoder GRU over a whole token sequence in one pallas_call.

    tokens: (T,) int32 token ids; h0: (1, H) f32 initial hidden (real H).
    Returns (T, H) f32 per-step outputs (== hidden states for a 1-layer GRU).
    """
    emb, wih, whh, bih, bhh, H = params
    Hp = emb.shape[1]
    T = int(tokens.shape[0])

    # nn.Embedding row gather is glue; done in plain JAX (see TODO above).
    x_seq = jnp.take(emb, tokens.astype(jnp.int32), axis=0)        # (T, Hp) f32
    h0p = jnp.pad(h0.reshape(1, H).astype(jnp.float32),
                  ((0, 0), (0, Hp - H)))                            # (1, Hp)

    # VMEM budget: real resident footprint x2 (Pallas buffering) + headroom,
    # clamped to <=48 MiB so it always fits v7x's 64 MiB per-core VMEM.
    footprint = (
        x_seq.size * 4 + h0p.size * 4 + bih.size * 4 + bhh.size * 4
        + wih.size * 2 + whh.size * 2          # bf16 weights
        + T * Hp * 4                           # output block
        + T * 3 * Hp * 4                       # gi scratch
    )
    vmem_limit = int(min(max(2 * footprint + (8 << 20), 16 << 20), 48 << 20))

    const2d = lambda i: (0, 0)   # whole-array resident blocks, single grid step

    out = pl.pallas_call(
        encoder_gru_kernel,
        out_shape=jax.ShapeDtypeStruct((T, Hp), jnp.float32),
        grid=(1,),
        in_specs=[
            pl.BlockSpec((1, Hp), const2d),           # h0
            pl.BlockSpec((T, Hp), const2d),           # embedded sequence
            pl.BlockSpec((Hp, 3 * Hp), const2d),      # W_ih fused (bf16)
            pl.BlockSpec((Hp, 3 * Hp), const2d),      # W_hh fused (bf16)
            pl.BlockSpec((1, 3 * Hp), const2d),       # b_ih
            pl.BlockSpec((1, 3 * Hp), const2d),       # b_hh
        ],
        out_specs=pl.BlockSpec((T, Hp), const2d),     # resident output block
        scratch_shapes=[pltpu.VMEM((T, 3 * Hp), jnp.float32)],  # gi_seq scratch
        compiler_params=pltpu.CompilerParams(
            dimension_semantics=("arbitrary",),
            vmem_limit_bytes=vmem_limit),
    )(h0p, x_seq, wih, whh, bih, bhh)

    return out[:, :H]


def encoder_rnn_forward(token, hidden, params):
    """Mirrors EncoderRNN.forward for a single token: returns (output, hidden),
    each shaped (1, 1, H)."""
    H = params.hidden_size
    tokens = jnp.reshape(token, (1,)).astype(jnp.int32)
    out = encoder_rnn_sequence(tokens, hidden.reshape(1, H), params)
    h_new = out[-1].reshape(1, 1, H)
    return h_new, h_new


def pack_params(emb, wih, whh, bih, bhh, *, lane=128):
    """Repack torch-layout GRU params to the kernel layout, lane-padding H.
    wih/whh: (3H, H) row-chunked (r, z, n) -> (Hp, 3Hp) bf16 column-chunked.
    bih/bhh: (3H,) -> (1, 3Hp) f32.  emb: (V, H) -> (V, Hp) f32.
    Zero padding is exact: padded h lanes stay 0 through the recurrence."""
    V, H = emb.shape
    Hp = _round_up(H, lane)
    pad = Hp - H

    def fuse_w(w):                                    # (3H, H) torch layout
        gates = []
        for g in range(3):
            wg = jnp.transpose(w[g * H:(g + 1) * H, :])       # (H_in, H_out)
            gates.append(jnp.pad(wg, ((0, pad), (0, pad))))   # (Hp, Hp)
        return jnp.concatenate(gates, axis=1).astype(jnp.bfloat16)  # (Hp, 3Hp)

    def fuse_b(b):                                    # (3H,)
        gates = [jnp.pad(b[g * H:(g + 1) * H], (0, pad)) for g in range(3)]
        return jnp.concatenate(gates, 0).reshape(1, 3 * Hp).astype(jnp.float32)

    emb_p = jnp.pad(emb.astype(jnp.float32), ((0, 0), (0, pad)))
    return EncoderParams(emb=emb_p, wih=fuse_w(wih), whh=fuse_w(whh),
                         bih=fuse_b(bih), bhh=fuse_b(bhh), hidden_size=H)


def reference_sequence(tokens, h0, emb, wih, whh, bih, bhh):
    """Pure-JAX reference replicating torch.nn.GRU math with the same bf16
    weight/activation quantization and f32 accumulation the kernel uses."""
    H = emb.shape[1]
    wih_t = jnp.transpose(wih).astype(jnp.bfloat16).astype(jnp.float32)  # (H,3H)
    whh_t = jnp.transpose(whh).astype(jnp.bfloat16).astype(jnp.float32)
    bih2 = bih.reshape(1, 3 * H).astype(jnp.float32)
    bhh2 = bhh.reshape(1, 3 * H).astype(jnp.float32)
    h = h0.reshape(1, H).astype(jnp.float32)
    outs = []
    for t in range(int(tokens.shape[0])):
        x = emb[tokens[t]].reshape(1, H).astype(jnp.float32)
        xb = x.astype(jnp.bfloat16).astype(jnp.float32)
        hb = h.astype(jnp.bfloat16).astype(jnp.float32)
        gi = xb @ wih_t + bih2
        gh = hb @ whh_t + bhh2
        r = jax.nn.sigmoid(gi[:, :H] + gh[:, :H])
        z = jax.nn.sigmoid(gi[:, H:2 * H] + gh[:, H:2 * H])
        n = jnp.tanh(gi[:, 2 * H:] + r * gh[:, 2 * H:])
        h = (1.0 - z) * n + z * h
        outs.append(h)
    return jnp.concatenate(outs, axis=0)


def _make_random_params(key, input_size, hidden_size):
    k_emb, k_wih, k_whh, k_bih, k_bhh = jax.random.split(key, 5)
    bound = 1.0 / float(hidden_size) ** 0.5
    emb = jax.random.normal(k_emb, (input_size, hidden_size), jnp.float32)
    wih = jax.random.uniform(k_wih, (3 * hidden_size, hidden_size),
                             jnp.float32, -bound, bound)
    whh = jax.random.uniform(k_whh, (3 * hidden_size, hidden_size),
                             jnp.float32, -bound, bound)
    bih = jax.random.uniform(k_bih, (3 * hidden_size,), jnp.float32, -bound, bound)
    bhh = jax.random.uniform(k_bhh, (3 * hidden_size,), jnp.float32, -bound, bound)
    return emb, wih, whh, bih, bhh


if __name__ == "__main__":
    key = jax.random.PRNGKey(0)
    k_par, k_tok, k_par2, k_tok2 = jax.random.split(key, 4)

    # ---- Main demo: small, lane-aligned shapes (module default H is 512). ----
    input_size = 16       # vocabulary size (small synthetic)
    hidden_size = 128     # lane-dense hidden size
    seq_len = 8           # encoder sequence length

    emb, wih, whh, bih, bhh = _make_random_params(k_par, input_size, hidden_size)
    params = pack_params(emb, wih, whh, bih, bhh)

    tokens = jax.random.randint(k_tok, (seq_len,), 0, input_size, jnp.int32)
    hidden0 = jnp.zeros((1, 1, hidden_size), jnp.float32)     # initHidden()

    # Sequence-level call: one kernel, weights VMEM-resident, in-kernel time loop.
    outputs = encoder_rnn_sequence(tokens, hidden0.reshape(1, hidden_size), params)
    jax.block_until_ready(outputs)

    # Single-step call with the original module's forward signature/shapes.
    out1, hid1 = encoder_rnn_forward(tokens[0], hidden0, params)
    jax.block_until_ready((out1, hid1))

    # Correctness vs. pure-JAX reference of torch.nn.GRU math.
    ref_outputs = reference_sequence(tokens, hidden0.reshape(1, hidden_size),
                                     emb, wih, whh, bih, bhh)
    assert outputs.shape == (seq_len, hidden_size)
    assert out1.shape == (1, 1, hidden_size) and hid1.shape == (1, 1, hidden_size)
    assert jnp.allclose(outputs, ref_outputs, atol=5e-3, rtol=5e-3), "sequence mismatch"
    assert jnp.allclose(out1.reshape(1, hidden_size), ref_outputs[0:1],
                        atol=5e-3, rtol=5e-3), "single-step output mismatch"
    assert jnp.allclose(hid1.reshape(1, hidden_size), ref_outputs[0:1],
                        atol=5e-3, rtol=5e-3), "single-step hidden mismatch"

    # ---- Secondary check: unaligned H exercises the lane-padding path. ----
    input_size2, hidden_size2, seq_len2 = 10, 96, 4
    emb2, wih2, whh2, bih2, bhh2 = _make_random_params(k_par2, input_size2,
                                                       hidden_size2)
    params2 = pack_params(emb2, wih2, whh2, bih2, bhh2)
    tokens2 = jax.random.randint(k_tok2, (seq_len2,), 0, input_size2, jnp.int32)
    h0_2 = jnp.zeros((1, hidden_size2), jnp.float32)
    outputs2 = encoder_rnn_sequence(tokens2, h0_2, params2)
    jax.block_until_ready(outputs2)
    ref2 = reference_sequence(tokens2, h0_2, emb2, wih2, whh2, bih2, bhh2)
    assert outputs2.shape == (seq_len2, hidden_size2)
    assert jnp.allclose(outputs2, ref2, atol=5e-3, rtol=5e-3), "padded-H mismatch"

    print("KERNEL_OK")
</pallas_src>

<mosaic_0001>
module attributes {stable_mosaic.version = 11 : i64} {
  func.func @encoder_gru_kernel(%arg0: i32, %arg1: memref<1x128xf32, #tpu.memory_space<vmem>>, %arg2: memref<8x128xf32, #tpu.memory_space<vmem>>, %arg3: memref<128x384xbf16, #tpu.memory_space<vmem>>, %arg4: memref<128x384xbf16, #tpu.memory_space<vmem>>, %arg5: memref<1x384xf32, #tpu.memory_space<vmem>>, %arg6: memref<1x384xf32, #tpu.memory_space<vmem>>, %arg7: memref<8x128xf32, #tpu.memory_space<vmem>>, %arg8: memref<8x384xf32, #tpu.memory_space<vmem>>) attributes {dimension_semantics = [#tpu.dimension_semantics<arbitrary>], iteration_bounds = array<i64: 1>, scalar_prefetch = 0 : i64, scratch_operands = 1 : i64, tpu.core_type = #tpu.core_type<tc>, window_params = [{pipeline_mode = #tpu.pipeline_mode<synchronous>, transform_indices = @transform_0, window_bounds = array<i64: 1, 128>}, {pipeline_mode = #tpu.pipeline_mode<synchronous>, transform_indices = @transform_1, window_bounds = array<i64: 8, 128>}, {pipeline_mode = #tpu.pipeline_mode<synchronous>, transform_indices = @transform_2, window_bounds = array<i64: 128, 384>}, {pipeline_mode = #tpu.pipeline_mode<synchronous>, transform_indices = @transform_3, window_bounds = array<i64: 128, 384>}, {pipeline_mode = #tpu.pipeline_mode<synchronous>, transform_indices = @transform_4, window_bounds = array<i64: 1, 384>}, {pipeline_mode = #tpu.pipeline_mode<synchronous>, transform_indices = @transform_5, window_bounds = array<i64: 1, 384>}, {pipeline_mode = #tpu.pipeline_mode<synchronous>, transform_indices = @transform_6, window_bounds = array<i64: 8, 128>}]} {
    %c0 = arith.constant 0 : index
    %c0_0 = arith.constant 0 : index
    %0 = vector.load %arg2[%c0, %c0_0] : memref<8x128xf32, #tpu.memory_space<vmem>>, vector<8x128xf32>
    %1 = arith.truncf %0 : vector<8x128xf32> to vector<8x128xbf16>
    %c0_1 = arith.constant 0 : index
    %c0_2 = arith.constant 0 : index
    %2 = vector.load %arg3[%c0_1, %c0_2] : memref<128x384xbf16, #tpu.memory_space<vmem>>, vector<128x384xbf16>
    %cst = arith.constant dense<0.000000e+00> : vector<8x384xf32>
    %3 = tpu.matmul %1, %2, %cst {dimension_numbers = #tpu.dot_dimension_numbers<[1], [0], [0], [1], [0, 0, 1, 1], [], []>} : vector<8x128xbf16>, vector<128x384xbf16>, vector<8x384xf32> -> vector<8x384xf32>
    %c0_3 = arith.constant 0 : index
    %c0_4 = arith.constant 0 : index
    %4 = vector.load %arg5[%c0_3, %c0_4] : memref<1x384xf32, #tpu.memory_space<vmem>>, vector<1x384xf32>
    %5 = vector.broadcast %4 : vector<1x384xf32> to vector<8x384xf32>
    %6 = arith.addf %3, %5 : vector<8x384xf32>
    %c0_5 = arith.constant 0 : index
    %c0_6 = arith.constant 0 : index
    %7 = vector.load %arg8[%c0_5, %c0_6] : memref<8x384xf32, #tpu.memory_space<vmem>>, vector<8x384xf32>
    tpu.vector_store %arg8[%c0_5, %c0_6], %6 {strides = array<i32>} : memref<8x384xf32, #tpu.memory_space<vmem>>, vector<8x384xf32>,
    %c0_7 = arith.constant 0 : index
    %c0_8 = arith.constant 0 : index
    %8 = vector.load %arg1[%c0_7, %c0_8] : memref<1x128xf32, #tpu.memory_space<vmem>>, vector<1x128xf32>
    %c0_i32 = arith.constant 0 : i32
    %9 = arith.index_cast %c0_i32 : i32 to index
    %c0_9 = arith.constant 0 : index
    %10 = vector.load %arg8[%9, %c0_9] : memref<8x384xf32, #tpu.memory_space<vmem>>, vector<1x384xf32>
    %11 = arith.truncf %8 : vector<1x128xf32> to vector<1x128xbf16>
    %c0_10 = arith.constant 0 : index
    %c0_11 = arith.constant 0 : index
    %12 = vector.load %arg4[%c0_10, %c0_11] : memref<128x384xbf16, #tpu.memory_space<vmem>>, vector<128x384xbf16>
    %cst_12 = arith.constant dense<0.000000e+00> : vector<1x384xf32>
    %13 = tpu.matmul %11, %12, %cst_12 {dimension_numbers = #tpu.dot_dimension_numbers<[1], [0], [0], [1], [0, 0, 1, 1], [], []>} : vector<1x128xbf16>, vector<128x384xbf16>, vector<1x384xf32> -> vector<1x384xf32>
    %c0_13 = arith.constant 0 : index
    %c0_14 = arith.constant 0 : index
    %14 = vector.load %arg6[%c0_13, %c0_14] : memref<1x384xf32, #tpu.memory_space<vmem>>, vector<1x384xf32>
    %15 = arith.addf %13, %14 : vector<1x384xf32>
    %16 = vector.extract_strided_slice %10 {offsets = [0, 0], sizes = [1, 256], strides = [1, 1]} : vector<1x384xf32> to vector<1x256xf32>
    %17 = vector.extract_strided_slice %15 {offsets = [0, 0], sizes = [1, 256], strides = [1, 1]} : vector<1x384xf32> to vector<1x256xf32>
    %18 = arith.addf %16, %17 : vector<1x256xf32>
    %19 = arith.negf %18 : vector<1x256xf32>
    %20 = math.exp %19 : vector<1x256xf32>
    %cst_15 = arith.constant 1.000000e+00 : f32
    %21 = vector.broadcast %cst_15 : f32 to vector<1x256xf32>
    %22 = arith.addf %21, %20 : vector<1x256xf32>
    %23 = arith.divf %21, %22 : vector<1x256xf32>
    %24 = vector.extract_strided_slice %23 {offsets = [0, 0], sizes = [1, 128], strides = [1, 1]} : vector<1x256xf32> to vector<1x128xf32>
    %25 = vector.extract_strided_slice %23 {offsets = [0, 128], sizes = [1, 128], strides = [1, 1]} : vector<1x256xf32> to vector<1x128xf32>
    %26 = vector.extract_strided_slice %10 {offsets = [0, 256], sizes = [1, 128], strides = [1, 1]} : vector<1x384xf32> to vector<1x128xf32>
    %27 = vector.extract_strided_slice %15 {offsets = [0, 256], sizes = [1, 128], strides = [1, 1]} : vector<1x384xf32> to vector<1x128xf32>
    %28 = arith.mulf %24, %27 : vector<1x128xf32>
    %29 = arith.addf %26, %28 : vector<1x128xf32>
    %30 = math.tanh %29 : vector<1x128xf32>
    %cst_16 = arith.constant 1.000000e+00 : f32
    %31 = vector.broadcast %cst_16 : f32 to vector<1x128xf32>
    %32 = arith.subf %31, %25 : vector<1x128xf32>
    %33 = arith.mulf %32, %30 : vector<1x128xf32>
    %34 = arith.mulf %25, %8 : vector<1x128xf32>
    %35 = arith.addf %33, %34 : vector<1x128xf32>
    %36 = arith.index_cast %c0_i32 : i32 to index
    %c0_17 = arith.constant 0 : index
    %37 = vector.load %arg7[%36, %c0_17] : memref<8x128xf32, #tpu.memory_space<vmem>>, vector<1x128xf32>
    tpu.vector_store %arg7[%36, %c0_17], %35 {strides = array<i32>} : memref<8x128xf32, #tpu.memory_space<vmem>>, vector<1x128xf32>,
    %c1_i32 = arith.constant 1 : i32
    %38 = arith.index_cast %c1_i32 : i32 to index
    %c0_18 = arith.constant 0 : index
    %39 = vector.load %arg8[%38, %c0_18] : memref<8x384xf32, #tpu.memory_space<vmem>>, vector<1x384xf32>
    %40 = arith.truncf %35 : vector<1x128xf32> to vector<1x128xbf16>
    %c0_19 = arith.constant 0 : index
    %c0_20 = arith.constant 0 : index
    %41 = vector.load %arg4[%c0_19, %c0_20] : memref<128x384xbf16, #tpu.memory_space<vmem>>, vector<128x384xbf16>
    %cst_21 = arith.constant dense<0.000000e+00> : vector<1x384xf32>
    %42 = tpu.matmul %40, %41, %cst_21 {dimension_numbers = #tpu.dot_dimension_numbers<[1], [0], [0], [1], [0, 0, 1, 1], [], []>} : vector<1x128xbf16>, vector<128x384xbf16>, vector<1x384xf32> -> vector<1x384xf32>
    %c0_22 = arith.constant 0 : index
    %c0_23 = arith.constant 0 : index
    %43 = vector.load %arg6[%c0_22, %c0_23] : memref<1x384xf32, #tpu.memory_space<vmem>>, vector<1x384xf32>
    %44 = arith.addf %42, %43 : vector<1x384xf32>
    %45 = vector.extract_strided_slice %39 {offsets = [0, 0], sizes = [1, 256], strides = [1, 1]} : vector<1x384xf32> to vector<1x256xf32>
    %46 = vector.extract_strided_slice %44 {offsets = [0, 0], sizes = [1, 256], strides = [1, 1]} : vector<1x384xf32> to vector<1x256xf32>
    %47 = arith.addf %45, %46 : vector<1x256xf32>
    %48 = arith.negf %47 : vector<1x256xf32>
    %49 = math.exp %48 : vector<1x256xf32>
    %cst_24 = arith.constant 1.000000e+00 : f32
    %50 = vector.broadcast %cst_24 : f32 to vector<1x256xf32>
    %51 = arith.addf %50, %49 : vector<1x256xf32>
    %52 = arith.divf %50, %51 : vector<1x256xf32>
    %53 = vector.extract_strided_slice %52 {offsets = [0, 0], sizes = [1, 128], strides = [1, 1]} : vector<1x256xf32> to vector<1x128xf32>
    %54 = vector.extract_strided_slice %52 {offsets = [0, 128], sizes = [1, 128], strides = [1, 1]} : vector<1x256xf32> to vector<1x128xf32>
    %55 = vector.extract_strided_slice %39 {offsets = [0, 256], sizes = [1, 128], strides = [1, 1]} : vector<1x384xf32> to vector<1x128xf32>
    %56 = vector.extract_strided_slice %44 {offsets = [0, 256], sizes = [1, 128], strides = [1, 1]} : vector<1x384xf32> to vector<1x128xf32>
    %57 = arith.mulf %53, %56 : vector<1x128xf32>
    %58 = arith.addf %55, %57 : vector<1x128xf32>
    %59 = math.tanh %58 : vector<1x128xf32>
    %cst_25 = arith.constant 1.000000e+00 : f32
    %60 = vector.broadcast %cst_25 : f32 to vector<1x128xf32>
    %61 = arith.subf %60, %54 : vector<1x128xf32>
    %62 = arith.mulf %61, %59 : vector<1x128xf32>
    %63 = arith.mulf %54, %35 : vector<1x128xf32>
    %64 = arith.addf %62, %63 : vector<1x128xf32>
    %65 = arith.index_cast %c1_i32 : i32 to index
    %c0_26 = arith.constant 0 : index
    %66 = vector.load %arg7[%65, %c0_26] : memref<8x128xf32, #tpu.memory_space<vmem>>, vector<1x128xf32>
    tpu.vector_store %arg7[%65, %c0_26], %64 {strides = array<i32>} : memref<8x128xf32, #tpu.memory_space<vmem>>, vector<1x128xf32>,
    %c2_i32 = arith.constant 2 : i32
    %67 = arith.index_cast %c2_i32 : i32 to index
    %c0_27 = arith.constant 0 : index
    %68 = vector.load %arg8[%67, %c0_27] : memref<8x384xf32, #tpu.memory_space<vmem>>, vector<1x384xf32>
    %69 = arith.truncf %64 : vector<1x128xf32> to vector<1x128xbf16>
    %c0_28 = arith.constant 0 : index
    %c0_29 = arith.constant 0 : index
    %70 = vector.load %arg4[%c0_28, %c0_29] : memref<128x384xbf16, #tpu.memory_space<vmem>>, vector<128x384xbf16>
    %cst_30 = arith.constant dense<0.000000e+00> : vector<1x384xf32>
    %71 = tpu.matmul %69, %70, %cst_30 {dimension_numbers = #tpu.dot_dimension_numbers<[1], [0], [0], [1], [0, 0, 1, 1], [], []>} : vector<1x128xbf16>, vector<128x384xbf16>, vector<1x384xf32> -> vector<1x384xf32>
    %c0_31 = arith.constant 0 : index
    %c0_32 = arith.constant 0 : index
    %72 = vector.load %arg6[%c0_31, %c0_32] : memref<1x384xf32, #tpu.memory_space<vmem>>, vector<1x384xf32>
    %73 = arith.addf %71, %72 : vector<1x384xf32>
    %74 = vector.extract_strided_slice %68 {offsets = [0, 0], sizes = [1, 256], strides = [1, 1]} : vector<1x384xf32> to vector<1x256xf32>
    %75 = vector.extract_strided_slice %73 {offsets = [0, 0], sizes = [1, 256], strides = [1, 1]} : vector<1x384xf32> to vector<1x256xf32>
    %76 = arith.addf %74, %75 : vector<1x256xf32>
    %77 = arith.negf %76 : vector<1x256xf32>
    %78 = math.exp %77 : vector<1x256xf32>
    %cst_33 = arith.constant 1.000000e+00 : f32
    %79 = vector.broadcast %cst_33 : f32 to vector<1x256xf32>
    %80 = arith.addf %79, %78 : vector<1x256xf32>
    %81 = arith.divf %79, %80 : vector<1x256xf32>
    %82 = vector.extract_strided_slice %81 {offsets = [0, 0], sizes = [1, 128], strides = [1, 1]} : vector<1x256xf32> to vector<1x128xf32>
    %83 = vector.extract_strided_slice %81 {offsets = [0, 128], sizes = [1, 128], strides = [1, 1]} : vector<1x256xf32> to vector<1x128xf32>
    %84 = vector.extract_strided_slice %68 {offsets = [0, 256], sizes = [1, 128], strides = [1, 1]} : vector<1x384xf32> to vector<1x128xf32>
    %85 = vector.extract_strided_slice %73 {offsets = [0, 256], sizes = [1, 128], strides = [1, 1]} : vector<1x384xf32> to vector<1x128xf32>
    %86 = arith.mulf %82, %85 : vector<1x128xf32>
    %87 = arith.addf %84, %86 : vector<1x128xf32>
    %88 = math.tanh %87 : vector<1x128xf32>
    %cst_34 = arith.constant 1.000000e+00 : f32
    %89 = vector.broadcast %cst_34 : f32 to vector<1x128xf32>
    %90 = arith.subf %89, %83 : vector<1x128xf32>
    %91 = arith.mulf %90, %88 : vector<1x128xf32>
    %92 = arith.mulf %83, %64 : vector<1x128xf32>
    %93 = arith.addf %91, %92 : vector<1x128xf32>
    %94 = arith.index_cast %c2_i32 : i32 to index
    %c0_35 = arith.constant 0 : index
    %95 = vector.load %arg7[%94, %c0_35] : memref<8x128xf32, #tpu.memory_space<vmem>>, vector<1x128xf32>
    tpu.vector_store %arg7[%94, %c0_35], %93 {strides = array<i32>} : memref<8x128xf32, #tpu.memory_space<vmem>>, vector<1x128xf32>,
    %c3_i32 = arith.constant 3 : i32
    %96 = arith.index_cast %c3_i32 : i32 to index
    %c0_36 = arith.constant 0 : index
    %97 = vector.load %arg8[%96, %c0_36] : memref<8x384xf32, #tpu.memory_space<vmem>>, vector<1x384xf32>
    %98 = arith.truncf %93 : vector<1x128xf32> to vector<1x128xbf16>
    %c0_37 = arith.constant 0 : index
    %c0_38 = arith.constant 0 : index
    %99 = vector.load %arg4[%c0_37, %c0_38] : memref<128x384xbf16, #tpu.memory_space<vmem>>, vector<128x384xbf16>
    %cst_39 = arith.constant dense<0.000000e+00> : vector<1x384xf32>
    %100 = tpu.matmul %98, %99, %cst_39 {dimension_numbers = #tpu.dot_dimension_numbers<[1], [0], [0], [1], [0, 0, 1, 1], [], []>} : vector<1x128xbf16>, vector<128x384xbf16>, vector<1x384xf32> -> vector<1x384xf32>
    %c0_40 = arith.constant 0 : index
    %c0_41 = arith.constant 0 : index
    %101 = vector.load %arg6[%c0_40, %c0_41] : memref<1x384xf32, #tpu.memory_space<vmem>>, vector<1x384xf32>
    %102 = arith.addf %100, %101 : vector<1x384xf32>
    %103 = vector.extract_strided_slice %97 {offsets = [0, 0], sizes = [1, 256], strides = [1, 1]} : vector<1x384xf32> to vector<1x256xf32>
    %104 = vector.extract_strided_slice %102 {offsets = [0, 0], sizes = [1, 256], strides = [1, 1]} : vector<1x384xf32> to vector<1x256xf32>
    %105 = arith.addf %103, %104 : vector<1x256xf32>
    %106 = arith.negf %105 : vector<1x256xf32>
    %107 = math.exp %106 : vector<1x256xf32>
    %cst_42 = arith.constant 1.000000e+00 : f32
    %108 = vector.broadcast %cst_42 : f32 to vector<1x256xf32>
    %109 = arith.addf %108, %107 : vector<1x256xf32>
    %110 = arith.divf %108, %109 : vector<1x256xf32>
    %111 = vector.extract_strided_slice %110 {offsets = [0, 0], sizes = [1, 128], strides = [1, 1]} : vector<1x256xf32> to vector<1x128xf32>
    %112 = vector.extract_strided_slice %110 {offsets = [0, 128], sizes = [1, 128], strides = [1, 1]} : vector<1x256xf32> to vector<1x128xf32>
    %113 = vector.extract_strided_slice %97 {offsets = [0, 256], sizes = [1, 128], strides = [1, 1]} : vector<1x384xf32> to vector<1x128xf32>
    %114 = vector.extract_strided_slice %102 {offsets = [0, 256], sizes = [1, 128], strides = [1, 1]} : vector<1x384xf32> to vector<1x128xf32>
    %115 = arith.mulf %111, %114 : vector<1x128xf32>
    %116 = arith.addf %113, %115 : vector<1x128xf32>
    %117 = math.tanh %116 : vector<1x128xf32>
    %cst_43 = arith.constant 1.000000e+00 : f32
    %118 = vector.broadcast %cst_43 : f32 to vector<1x128xf32>
    %119 = arith.subf %118, %112 : vector<1x128xf32>
    %120 = arith.mulf %119, %117 : vector<1x128xf32>
    %121 = arith.mulf %112, %93 : vector<1x128xf32>
    %122 = arith.addf %120, %121 : vector<1x128xf32>
    %123 = arith.index_cast %c3_i32 : i32 to index
    %c0_44 = arith.constant 0 : index
    %124 = vector.load %arg7[%123, %c0_44] : memref<8x128xf32, #tpu.memory_space<vmem>>, vector<1x128xf32>
    tpu.vector_store %arg7[%123, %c0_44], %122 {strides = array<i32>} : memref<8x128xf32, #tpu.memory_space<vmem>>, vector<1x128xf32>,
    %c4_i32 = arith.constant 4 : i32
    %125 = arith.index_cast %c4_i32 : i32 to index
    %c0_45 = arith.constant 0 : index
    %126 = vector.load %arg8[%125, %c0_45] : memref<8x384xf32, #tpu.memory_space<vmem>>, vector<1x384xf32>
    %127 = arith.truncf %122 : vector<1x128xf32> to vector<1x128xbf16>
    %c0_46 = arith.constant 0 : index
    %c0_47 = arith.constant 0 : index
    %128 = vector.load %arg4[%c0_46, %c0_47] : memref<128x384xbf16, #tpu.memory_space<vmem>>, vector<128x384xbf16>
    %cst_48 = arith.constant dense<0.000000e+00> : vector<1x384xf32>
    %129 = tpu.matmul %127, %128, %cst_48 {dimension_numbers = #tpu.dot_dimension_numbers<[1], [0], [0], [1], [0, 0, 1, 1], [], []>} : vector<1x128xbf16>, vector<128x384xbf16>, vector<1x384xf32> -> vector<1x384xf32>
    %c0_49 = arith.constant 0 : index
    %c0_50 = arith.constant 0 : index
    %130 = vector.load %arg6[%c0_49, %c0_50] : memref<1x384xf32, #tpu.memory_space<vmem>>, vector<1x384xf32>
    %131 = arith.addf %129, %130 : vector<1x384xf32>
    %132 = vector.extract_strided_slice %126 {offsets = [0, 0], sizes = [1, 256], strides = [1, 1]} : vector<1x384xf32> to vector<1x256xf32>
    %133 = vector.extract_strided_slice %131 {offsets = [0, 0], sizes = [1, 256], strides = [1, 1]} : vector<1x384xf32> to vector<1x256xf32>
    %134 = arith.addf %132, %133 : vector<1x256xf32>
    %135 = arith.negf %134 : vector<1x256xf32>
    %136 = math.exp %135 : vector<1x256xf32>
    %cst_51 = arith.constant 1.000000e+00 : f32
    %137 = vector.broadcast %cst_51 : f32 to vector<1x256xf32>
    %138 = arith.addf %137, %136 : vector<1x256xf32>
    %139 = arith.divf %137, %138 : vector<1x256xf32>
    %140 = vector.extract_strided_slice %139 {offsets = [0, 0], sizes = [1, 128], strides = [1, 1]} : vector<1x256xf32> to vector<1x128xf32>
    %141 = vector.extract_strided_slice %139 {offsets = [0, 128], sizes = [1, 128], strides = [1, 1]} : vector<1x256xf32> to vector<1x128xf32>
    %142 = vector.extract_strided_slice %126 {offsets = [0, 256], sizes = [1, 128], strides = [1, 1]} : vector<1x384xf32> to vector<1x128xf32>
    %143 = vector.extract_strided_slice %131 {offsets = [0, 256], sizes = [1, 128], strides = [1, 1]} : vector<1x384xf32> to vector<1x128xf32>
    %144 = arith.mulf %140, %143 : vector<1x128xf32>
    %145 = arith.addf %142, %144 : vector<1x128xf32>
    %146 = math.tanh %145 : vector<1x128xf32>
    %cst_52 = arith.constant 1.000000e+00 : f32
    %147 = vector.broadcast %cst_52 : f32 to vector<1x128xf32>
    %148 = arith.subf %147, %141 : vector<1x128xf32>
    %149 = arith.mulf %148, %146 : vector<1x128xf32>
    %150 = arith.mulf %141, %122 : vector<1x128xf32>
    %151 = arith.addf %149, %150 : vector<1x128xf32>
    %152 = arith.index_cast %c4_i32 : i32 to index
    %c0_53 = arith.constant 0 : index
    %153 = vector.load %arg7[%152, %c0_53] : memref<8x128xf32, #tpu.memory_space<vmem>>, vector<1x128xf32>
    tpu.vector_store %arg7[%152, %c0_53], %151 {strides = array<i32>} : memref<8x128xf32, #tpu.memory_space<vmem>>, vector<1x128xf32>,
    %c5_i32 = arith.constant 5 : i32
    %154 = arith.index_cast %c5_i32 : i32 to index
    %c0_54 = arith.constant 0 : index
    %155 = vector.load %arg8[%154, %c0_54] : memref<8x384xf32, #tpu.memory_space<vmem>>, vector<1x384xf32>
    %156 = arith.truncf %151 : vector<1x128xf32> to vector<1x128xbf16>
    %c0_55 = arith.constant 0 : index
    %c0_56 = arith.constant 0 : index
    %157 = vector.load %arg4[%c0_55, %c0_56] : memref<128x384xbf16, #tpu.memory_space<vmem>>, vector<128x384xbf16>
    %cst_57 = arith.constant dense<0.000000e+00> : vector<1x384xf32>
    %158 = tpu.matmul %156, %157, %cst_57 {dimension_numbers = #tpu.dot_dimension_numbers<[1], [0], [0], [1], [0, 0, 1, 1], [], []>} : vector<1x128xbf16>, vector<128x384xbf16>, vector<1x384xf32> -> vector<1x384xf32>
    %c0_58 = arith.constant 0 : index
    %c0_59 = arith.constant 0 : index
    %159 = vector.load %arg6[%c0_58, %c0_59] : memref<1x384xf32, #tpu.memory_space<vmem>>, vector<1x384xf32>
    %160 = arith.addf %158, %159 : vector<1x384xf32>
    %161 = vector.extract_strided_slice %155 {offsets = [0, 0], sizes = [1, 256], strides = [1, 1]} : vector<1x384xf32> to vector<1x256xf32>
    %162 = vector.extract_strided_slice %160 {offsets = [0, 0], sizes = [1, 256], strides = [1, 1]} : vector<1x384xf32> to vector<1x256xf32>
    %163 = arith.addf %161, %162 : vector<1x256xf32>
    %164 = arith.negf %163 : vector<1x256xf32>
    %165 = math.exp %164 : vector<1x256xf32>
    %cst_60 = arith.constant 1.000000e+00 : f32
    %166 = vector.broadcast %cst_60 : f32 to vector<1x256xf32>
    %167 = arith.addf %166, %165 : vector<1x256xf32>
    %168 = arith.divf %166, %167 : vector<1x256xf32>
    %169 = vector.extract_strided_slice %168 {offsets = [0, 0], sizes = [1, 128], strides = [1, 1]} : vector<1x256xf32> to vector<1x128xf32>
    %170 = vector.extract_strided_slice %168 {offsets = [0, 128], sizes = [1, 128], strides = [1, 1]} : vector<1x256xf32> to vector<1x128xf32>
    %171 = vector.extract_strided_slice %155 {offsets = [0, 256], sizes = [1, 128], strides = [1, 1]} : vector<1x384xf32> to vector<1x128xf32>
    %172 = vector.extract_strided_slice %160 {offsets = [0, 256], sizes = [1, 128], strides = [1, 1]} : vector<1x384xf32> to vector<1x128xf32>
    %173 = arith.mulf %169, %172 : vector<1x128xf32>
    %174 = arith.addf %171, %173 : vector<1x128xf32>
    %175 = math.tanh %174 : vector<1x128xf32>
    %cst_61 = arith.constant 1.000000e+00 : f32
    %176 = vector.broadcast %cst_61 : f32 to vector<1x128xf32>
    %177 = arith.subf %176, %170 : vector<1x128xf32>
    %178 = arith.mulf %177, %175 : vector<1x128xf32>
    %179 = arith.mulf %170, %151 : vector<1x128xf32>
    %180 = arith.addf %178, %179 : vector<1x128xf32>
    %181 = arith.index_cast %c5_i32 : i32 to index
    %c0_62 = arith.constant 0 : index
    %182 = vector.load %arg7[%181, %c0_62] : memref<8x128xf32, #tpu.memory_space<vmem>>, vector<1x128xf32>
    tpu.vector_store %arg7[%181, %c0_62], %180 {strides = array<i32>} : memref<8x128xf32, #tpu.memory_space<vmem>>, vector<1x128xf32>,
    %c6_i32 = arith.constant 6 : i32
    %183 = arith.index_cast %c6_i32 : i32 to index
    %c0_63 = arith.constant 0 : index
    %184 = vector.load %arg8[%183, %c0_63] : memref<8x384xf32, #tpu.memory_space<vmem>>, vector<1x384xf32>
    %185 = arith.truncf %180 : vector<1x128xf32> to vector<1x128xbf16>
    %c0_64 = arith.constant 0 : index
    %c0_65 = arith.constant 0 : index
    %186 = vector.load %arg4[%c0_64, %c0_65] : memref<128x384xbf16, #tpu.memory_space<vmem>>, vector<128x384xbf16>
    %cst_66 = arith.constant dense<0.000000e+00> : vector<1x384xf32>
    %187 = tpu.matmul %185, %186, %cst_66 {dimension_numbers = #tpu.dot_dimension_numbers<[1], [0], [0], [1], [0, 0, 1, 1], [], []>} : vector<1x128xbf16>, vector<128x384xbf16>, vector<1x384xf32> -> vector<1x384xf32>
    %c0_67 = arith.constant 0 : index
    %c0_68 = arith.constant 0 : index
    %188 = vector.load %arg6[%c0_67, %c0_68] : memref<1x384xf32, #tpu.memory_space<vmem>>, vector<1x384xf32>
    %189 = arith.addf %187, %188 : vector<1x384xf32>
    %190 = vector.extract_strided_slice %184 {offsets = [0, 0], sizes = [1, 256], strides = [1, 1]} : vector<1x384xf32> to vector<1x256xf32>
    %191 = vector.extract_strided_slice %189 {offsets = [0, 0], sizes = [1, 256], strides = [1, 1]} : vector<1x384xf32> to vector<1x256xf32>
    %192 = arith.addf %190, %191 : vector<1x256xf32>
    %193 = arith.negf %192 : vector<1x256xf32>
    %194 = math.exp %193 : vector<1x256xf32>
    %cst_69 = arith.constant 1.000000e+00 : f32
    %195 = vector.broadcast %cst_69 : f32 to vector<1x256xf32>
    %196 = arith.addf %195, %194 : vector<1x256xf32>
    %197 = arith.divf %195, %196 : vector<1x256xf32>
    %198 = vector.extract_strided_slice %197 {offsets = [0, 0], sizes = [1, 128], strides = [1, 1]} : vector<1x256xf32> to vector<1x128xf32>
    %199 = vector.extract_strided_slice %197 {offsets = [0, 128], sizes = [1, 128], strides = [1, 1]} : vector<1x256xf32> to vector<1x128xf32>
    %200 = vector.extract_strided_slice %184 {offsets = [0, 256], sizes = [1, 128], strides = [1, 1]} : vector<1x384xf32> to vector<1x128xf32>
    %201 = vector.extract_strided_slice %189 {offsets = [0, 256], sizes = [1, 128], strides = [1, 1]} : vector<1x384xf32> to vector<1x128xf32>
    %202 = arith.mulf %198, %201 : vector<1x128xf32>
    %203 = arith.addf %200, %202 : vector<1x128xf32>
    %204 = math.tanh %203 : vector<1x128xf32>
    %cst_70 = arith.constant 1.000000e+00 : f32
    %205 = vector.broadcast %cst_70 : f32 to vector<1x128xf32>
    %206 = arith.subf %205, %199 : vector<1x128xf32>
    %207 = arith.mulf %206, %204 : vector<1x128xf32>
    %208 = arith.mulf %199, %180 : vector<1x128xf32>
    %209 = arith.addf %207, %208 : vector<1x128xf32>
    %210 = arith.index_cast %c6_i32 : i32 to index
    %c0_71 = arith.constant 0 : index
    %211 = vector.load %arg7[%210, %c0_71] : memref<8x128xf32, #tpu.memory_space<vmem>>, vector<1x128xf32>
    tpu.vector_store %arg7[%210, %c0_71], %209 {strides = array<i32>} : memref<8x128xf32, #tpu.memory_space<vmem>>, vector<1x128xf32>,
    %c7_i32 = arith.constant 7 : i32
    %212 = arith.index_cast %c7_i32 : i32 to index
    %c0_72 = arith.constant 0 : index
    %213 = vector.load %arg8[%212, %c0_72] : memref<8x384xf32, #tpu.memory_space<vmem>>, vector<1x384xf32>
    %214 = arith.truncf %209 : vector<1x128xf32> to vector<1x128xbf16>
    %c0_73 = arith.constant 0 : index
    %c0_74 = arith.constant 0 : index
    %215 = vector.load %arg4[%c0_73, %c0_74] : memref<128x384xbf16, #tpu.memory_space<vmem>>, vector<128x384xbf16>
    %cst_75 = arith.constant dense<0.000000e+00> : vector<1x384xf32>
    %216 = tpu.matmul %214, %215, %cst_75 {dimension_numbers = #tpu.dot_dimension_numbers<[1], [0], [0], [1], [0, 0, 1, 1], [], []>} : vector<1x128xbf16>, vector<128x384xbf16>, vector<1x384xf32> -> vector<1x384xf32>
    %c0_76 = arith.constant 0 : index
    %c0_77 = arith.constant 0 : index
    %217 = vector.load %arg6[%c0_76, %c0_77] : memref<1x384xf32, #tpu.memory_space<vmem>>, vector<1x384xf32>
    %218 = arith.addf %216, %217 : vector<1x384xf32>
    %219 = vector.extract_strided_slice %213 {offsets = [0, 0], sizes = [1, 256], strides = [1, 1]} : vector<1x384xf32> to vector<1x256xf32>
    %220 = vector.extract_strided_slice %218 {offsets = [0, 0], sizes = [1, 256], strides = [1, 1]} : vector<1x384xf32> to vector<1x256xf32>
    %221 = arith.addf %219, %220 : vector<1x256xf32>
    %222 = arith.negf %221 : vector<1x256xf32>
    %223 = math.exp %222 : vector<1x256xf32>
    %cst_78 = arith.constant 1.000000e+00 : f32
    %224 = vector.broadcast %cst_78 : f32 to vector<1x256xf32>
    %225 = arith.addf %224, %223 : vector<1x256xf32>
    %226 = arith.divf %224, %225 : vector<1x256xf32>
    %227 = vector.extract_strided_slice %226 {offsets = [0, 0], sizes = [1, 128], strides = [1, 1]} : vector<1x256xf32> to vector<1x128xf32>
    %228 = vector.extract_strided_slice %226 {offsets = [0, 128], sizes = [1, 128], strides = [1, 1]} : vector<1x256xf32> to vector<1x128xf32>
    %229 = vector.extract_strided_slice %213 {offsets = [0, 256], sizes = [1, 128], strides = [1, 1]} : vector<1x384xf32> to vector<1x128xf32>
    %230 = vector.extract_strided_slice %218 {offsets = [0, 256], sizes = [1, 128], strides = [1, 1]} : vector<1x384xf32> to vector<1x128xf32>
    %231 = arith.mulf %227, %230 : vector<1x128xf32>
    %232 = arith.addf %229, %231 : vector<1x128xf32>
    %233 = math.tanh %232 : vector<1x128xf32>
    %cst_79 = arith.constant 1.000000e+00 : f32
    %234 = vector.broadcast %cst_79 : f32 to vector<1x128xf32>
    %235 = arith.subf %234, %228 : vector<1x128xf32>
    %236 = arith.mulf %235, %233 : vector<1x128xf32>
    %237 = arith.mulf %228, %209 : vector<1x128xf32>
    %238 = arith.addf %236, %237 : vector<1x128xf32>
    %239 = arith.index_cast %c7_i32 : i32 to index
    %c0_80 = arith.constant 0 : index
    %240 = vector.load %arg7[%239, %c0_80] : memref<8x128xf32, #tpu.memory_space<vmem>>, vector<1x128xf32>
    tpu.vector_store %arg7[%239, %c0_80], %238 {strides = array<i32>} : memref<8x128xf32, #tpu.memory_space<vmem>>, vector<1x128xf32>,
    %c8_i32 = arith.constant 8 : i32
    return
  }
  func.func @transform_0(%arg0: i32) -> (i32, i32) {
    %c0_i32 = arith.constant 0 : i32
    %c0_i32_0 = arith.constant 0 : i32
    %c0_i32_1 = arith.constant 0 : i32
    return %c0_i32, %c0_i32_0 : i32, i32
  }
  func.func @transform_1(%arg0: i32) -> (i32, i32) {
    %c0_i32 = arith.constant 0 : i32
    %c0_i32_0 = arith.constant 0 : i32
    %c0_i32_1 = arith.constant 0 : i32
    return %c0_i32, %c0_i32_0 : i32, i32
  }
  func.func @transform_2(%arg0: i32) -> (i32, i32) {
    %c0_i32 = arith.constant 0 : i32
    %c0_i32_0 = arith.constant 0 : i32
    %c0_i32_1 = arith.constant 0 : i32
    return %c0_i32, %c0_i32_0 : i32, i32
  }
  func.func @transform_3(%arg0: i32) -> (i32, i32) {
    %c0_i32 = arith.constant 0 : i32
    %c0_i32_0 = arith.constant 0 : i32
    %c0_i32_1 = arith.constant 0 : i32
    return %c0_i32, %c0_i32_0 : i32, i32
  }
  func.func @transform_4(%arg0: i32) -> (i32, i32) {
    %c0_i32 = arith.constant 0 : i32
    %c0_i32_0 = arith.constant 0 : i32
    %c0_i32_1 = arith.constant 0 : i32
    return %c0_i32, %c0_i32_0 : i32, i32
  }
  func.func @transform_5(%arg0: i32) -> (i32, i32) {
    %c0_i32 = arith.constant 0 : i32
    %c0_i32_0 = arith.constant 0 : i32
    %c0_i32_1 = arith.constant 0 : i32
    return %c0_i32, %c0_i32_0 : i32, i32
  }
  func.func @transform_6(%arg0: i32) -> (i32, i32) {
    %c0_i32 = arith.constant 0 : i32
    %c0_i32_0 = arith.constant 0 : i32
    %c0_i32_1 = arith.constant 0 : i32
    return %c0_i32, %c0_i32_0 : i32, i32
  }
}

</mosaic_0001>

<bundles_post_ra>
// kernel: tpu_custom_call.1
= control target key start
LH: loop header
LB: loop body
LE: loop exit
PB: predicated region body
PF: predicated region fallthrough
CT: control target
= control target key end

     0   :  { %11 = vsyncpa [#allocation4], 0  ;;  %s4078_s0 = inlined_call_operand.hbm [shape: f32[1,128], index: 0, kind: input, shape index: {}]   ;;  %s4079_s1 = inlined_call_operand.hbm [shape: f32[8,128], index: 1, kind: input, shape index: {}]   ;;  %s4080_s2 = inlined_call_operand.hbm [shape: bf16[128,384], index: 2, kind: input, shape index: {}]   ;;  %s4081_s3 = inlined_call_operand.hbm [shape: bf16[128,384], index: 3, kind: input, shape index: {}]   ;;  %s4082_s4 = inlined_call_operand.vmem [shape: f32[1,384], index: 4, kind: input, shape index: {}]   ;;  %s4083_s5 = inlined_call_operand.vmem [shape: f32[1,384], index: 5, kind: input, shape index: {}]   ;;  %s4084_s6 = inlined_call_operand.hbm [shape: f32[8,128], index: 6, kind: output, shape index: {}]  }
   0x1   :  { %12 = vsyncpa [#allocation7], 0 }
   0x2   :  { %13 = vsyncpa [#allocation10], 0 }
   0x3   :  { %14 = vsyncpa [#allocation5], 0  ;;  %s3562_s21 = smov [#allocation6]   ;;  %s3563_s23 = smov [#allocation3]  }
   0x4   :  { %s31_s22 = sshll.u32 %s3562_s21, 4  ;;  %s21_s24 = sshll.u32 %s3563_s23, 4  ;;  %s32_s22 = int_to_ptr.vmem [resolvable:$true] %s31_s22  ;;  %s22_s24 = int_to_ptr.vmem [resolvable:$true] %s21_s24 }
   0x5   :  { %s3444_s27 = scalar_lea.hbm %s4079_s1, 128 }
   0x6   :  { %p3445_p0 = scmp.ne.s32.totalorder %s4079_s1, %s3444_s27  ;;  %p3448_p1 = scmp.lt.u32.totalorder %s3444_s27, %s4079_s1 }
   0x8   :  { %p3450_p2 = pnand %p3448_p1, %p3445_p0 }
   0xa   :  { %3453 = shalt.err (!%p3450_p2)
}
   0xb   :  { %s3454_s8 = scalar_lea.vmem %s32_s22, 128  ;;  %p3459_p4 = scmp.lt.s32.totalorder %s32_s22, %s32_s22 }
   0xc   :  { %p3455_p3 = scmp.ne.s32.totalorder %s32_s22, %s3454_s8  ;;  %p3460_p5 = scmp.lt.s32.totalorder %s3454_s8, %s3454_s8 }
   0xe   :  { %p3461_p6 = por %p3460_p5, %p3459_p4 }
  0x10   :  { %p3462_p7 = pnand %p3461_p6, %p3455_p3 }
  0x12   :  { %3465 = shalt.err (!%p3462_p7)
}
  0x13   :  { %34 = dma.hbm_to_vmem [thread:$0]  %s4079_s1, 128, %s32_s22, [#allocation7]  }
  0x14   :  { %s3466_s13 = scalar_lea.hbm %s4078_s0, 16 }
  0x15   :  { %p3467_p8 = scmp.ne.s32.totalorder %s4078_s0, %s3466_s13  ;;  %p3470_p9 = scmp.lt.u32.totalorder %s3466_s13, %s4078_s0 }
  0x17   :  { %p3472_p10 = pnand %p3470_p9, %p3467_p8 }
  0x19   :  { %3475 = shalt.err (!%p3472_p10)
}
  0x1a   :  { %s3476_s18 = scalar_lea.vmem %s22_s24, 16  ;;  %s3480_s19 = scalar_lea.vmem %s22_s24, 32 }
  0x1b   :  { %p3477_p11 = scmp.ne.s32.totalorder %s22_s24, %s3476_s18  ;;  %p3481_p12 = scmp.lt.s32.totalorder %s22_s24, %s22_s24 }
  0x1c   :  { %p3482_p13 = scmp.lt.s32.totalorder %s3480_s19, %s3476_s18 }
  0x1e   :  { %p3483_p0 = por %p3482_p13, %p3481_p12 }
  0x20   :  { %p3484_p1 = pnand %p3483_p0, %p3477_p11 }
  0x22   :  { %3487 = shalt.err (!%p3484_p1)
}
  0x23   :  { %24 = dma.hbm_to_vmem [thread:$0]  %s4078_s0, 16, %s22_s24, [#allocation4]  }
  0x24   :  { %s3564_s21 = smov [#allocation8]   ;;  %s3488_s26 = scalar_lea.hbm %s4080_s2, 3072 }
  0x25   :  { %s40_s22 = sshll.u32 %s3564_s21, 4  ;;  %p3489_p2 = scmp.ne.s32.totalorder %s4080_s2, %s3488_s26  ;;  %s41_s22 = int_to_ptr.vmem [resolvable:$true] %s40_s22 }
  0x26   :  { %p3492_p3 = scmp.lt.u32.totalorder %s3488_s26, %s4080_s2 }
  0x28   :  { %p3494_p4 = pnand %p3492_p3, %p3489_p2 }
  0x2a   :  { %3497 = shalt.err (!%p3494_p4)
}
  0x2b   :  { %s3498_s7 = scalar_lea.vmem %s41_s22, 3072  ;;  %p3503_p6 = scmp.lt.s32.totalorder %s41_s22, %s41_s22 }
  0x2c   :  { %p3499_p5 = scmp.ne.s32.totalorder %s41_s22, %s3498_s7  ;;  %p3504_p7 = scmp.lt.s32.totalorder %s3498_s7, %s3498_s7 }
  0x2e   :  { %p3505_p8 = por %p3504_p7, %p3503_p6 }
  0x30   :  { %p3506_p9 = pnand %p3505_p8, %p3499_p5 }
  0x32   :  { %3509 = shalt.err (!%p3506_p9)
}
  0x33   :  { %s3565_s0 = smov 192   ;;  %s3566_s24 = smov 12  }
  0x34   :  { %46 = dma.hbm_to_vmem [thread:$0]  %s4080_s2, 3072, %s41_s22, [#allocation7], %s3565_s0, %s3565_s0, %s3566_s24  }
  0x35   :  { %s3567_s10 = smov [#allocation9]   ;;  %s3510_s14 = scalar_lea.hbm %s4081_s3, 3072 }
  0x36   :  { %s52_s11 = sshll.u32 %s3567_s10, 4  ;;  %p3511_p10 = scmp.ne.s32.totalorder %s4081_s3, %s3510_s14  ;;  %s53_s11 = int_to_ptr.vmem [resolvable:$true] %s52_s11 }
  0x37   :  { %p3514_p11 = scmp.lt.u32.totalorder %s3510_s14, %s4081_s3 }
  0x39   :  { %p3516_p12 = pnand %p3514_p11, %p3511_p10 }
  0x3b   :  { %3519 = shalt.err (!%p3516_p12)
}
  0x3c   :  { %s3520_s19 = scalar_lea.vmem %s53_s11, 3072  ;;  %p3525_p0 = scmp.lt.s32.totalorder %s53_s11, %s53_s11 }
  0x3d   :  { %p3521_p13 = scmp.ne.s32.totalorder %s53_s11, %s3520_s19  ;;  %p3526_p1 = scmp.lt.s32.totalorder %s3520_s19, %s3520_s19 }
  0x3f   :  { %p3527_p2 = por %p3526_p1, %p3525_p0 }
  0x41   :  { %p3528_p3 = pnand %p3527_p2, %p3521_p13 }
  0x43   :  { %3531 = shalt.err (!%p3528_p3)
}
  0x44   :  { %58 = dma.hbm_to_vmem [thread:$0]  %s4081_s3, 3072, %s53_s11, [#allocation10], %s3565_s0, %s3565_s0, %s3566_s24  }
  0x45   :  { %3554 = dma.done.wait [#allocation4], 16  }
  0x46   :  { %3555 = vsyncadd [#allocation4], 4294967280 }
  0x47   :  { %3556 = dma.done.wait [#allocation7], 3200  }
  0x48   :  { %3557 = vsyncadd [#allocation7], 4294964096 }
  0x49   :  { %3558 = dma.done.wait [#allocation10], 3072  }
  0x4a   :  { %3559 = vsyncadd [#allocation10], 4294964224  ;;  %v3568_v0 = vmov 0.0   ;;  %v3569_v1 = vmov 0   ;;  %vm3570_vm0 = vmmov 0   ;;  %v76_v26 = vld [vmem:[#allocation6] sm:$0xff]  ;;  %v112_v62 = vlaneseq }
  0x4b   :  { %3061 = vmatprep.subr.bf16.mxu1 %v3568_v0  ;;  %287 = vmatprep.mubr.bf16.mxu0 %v3569_v1  ;;  %v3252_v2 = vld [vmem:[#allocation8 + $0x4] ss:$12 sps:$4 sm:$0xff]   ;;  %v3254_v3 = vld [vmem:[#allocation8] ss:$12 sps:$4 sm:$0xff]   ;;  %v3255_v4 = vld [vmem:[#allocation8 + $0x8] ss:$12 sps:$4 sm:$0xff]   ;;  %v77_v28 = vpack.c.bf16 %v76_v26, %v76_v26 }
  0x4c   :  { %3077 = vmatprep.mubr.msk.bf16.mxu1 %vm3570_vm0, %v3568_v0  ;;  %255 = vmatprep.subr.bf16.mxu0 %v3252_v2  ;;  %v3256_v5 = vld [vmem:[#allocation8 + $0x1c] ss:$12 sps:$4 sm:$0xff]   ;;  %v3258_v6 = vld [vmem:[#allocation8 + $0x18] ss:$12 sps:$4 sm:$0xff]   ;;  %v3259_v7 = vld [vmem:[#allocation8 + $0x20] ss:$12 sps:$4 sm:$0xff]  }
  0x4d   :  { %256 = vmatpush1.bf16.msra.mxu0 %v3254_v3  ;;  %3062 = vmatpush3.bf16.msra.mxu1 %v3255_v4  ;;  %v3260_v8 = vld [vmem:[#allocation8 + $0x34] ss:$12 sps:$4 sm:$0xff]   ;;  %v3262_v9 = vld [vmem:[#allocation8 + $0x30] ss:$12 sps:$4 sm:$0xff]   ;;  %v3263_v10 = vld [vmem:[#allocation8 + $0x38] ss:$12 sps:$4 sm:$0xff]  }
  0x4e   :  { %257 = vmatprep.subr.bf16.mxu0 %v3256_v5  ;;  %3063 = vmatprep.subr.bf16.mxu1 %v3568_v0  ;;  %v3264_v11 = vld [vmem:[#allocation8 + $0x4c] ss:$12 sps:$4 sm:$0xff]   ;;  %v3266_v12 = vld [vmem:[#allocation8 + $0x48] ss:$12 sps:$4 sm:$0xff]   ;;  %v3267_v13 = vld [vmem:[#allocation8 + $0x50] ss:$12 sps:$4 sm:$0xff]  }
  0x4f   :  { %v3268_v14 = vld [vmem:[#allocation8 + $0x64] ss:$12 sps:$4 sm:$0xff]   ;;  %v3270_v15 = vld [vmem:[#allocation8 + $0x60] ss:$12 sps:$4 sm:$0xff]   ;;  %v3271_v16 = vld [vmem:[#allocation8 + $0x68] ss:$12 sps:$4 sm:$0xff]  }
  0x50   :  { %v3272_v17 = vld [vmem:[#allocation8 + $0x7c] ss:$12 sps:$4 sm:$0xff]   ;;  %v3274_v18 = vld [vmem:[#allocation8 + $0x78] ss:$12 sps:$4 sm:$0xff]   ;;  %v3275_v19 = vld [vmem:[#allocation8 + $0x80] ss:$12 sps:$4 sm:$0xff]  }
  0x51   :  { %258 = vmatpush1.bf16.msra.mxu0 %v3258_v6  ;;  %3064 = vmatpush3.bf16.msra.mxu1 %v3259_v7  ;;  %v3276_v20 = vld [vmem:[#allocation8 + $0x94] ss:$12 sps:$4 sm:$0xff]   ;;  %v3278_v21 = vld [vmem:[#allocation8 + $0x90] ss:$12 sps:$4 sm:$0xff]   ;;  %v3279_v22 = vld [vmem:[#allocation8 + $0x98] ss:$12 sps:$4 sm:$0xff]  }
  0x52   :  { %259 = vmatprep.subr.bf16.mxu0 %v3260_v8  ;;  %3065 = vmatprep.subr.bf16.mxu1 %v3568_v0  ;;  %v3280_v23 = vld [vmem:[#allocation8 + $0xac] ss:$12 sps:$4 sm:$0xff]   ;;  %v3282_v24 = vld [vmem:[#allocation8 + $0xa8] ss:$12 sps:$4 sm:$0xff]   ;;  %v3283_v25 = vld [vmem:[#allocation8 + $0xb0] ss:$12 sps:$4 sm:$0xff]  }
  0x53   :  { %v3666_v27 = vld [vmem:[#allocation9 + $0x4] ss:$12 sps:$4 sm:$0xff]   ;;  %v3669_v29 = vld [vmem:[#allocation9] ss:$12 sps:$4 sm:$0xff]   ;;  %v3672_v30 = vld [vmem:[#allocation9 + $0x1c] ss:$12 sps:$4 sm:$0xff]  }
  0x54   :  { %v3308_v31 = vld [vmem:[#allocation9 + $0x8] ss:$12 sps:$4 sm:$0xff]   ;;  %v3676_v32 = vld [vmem:[#allocation9 + $0x18] ss:$12 sps:$4 sm:$0xff]   ;;  %v3682_v34 = vld [vmem:[#allocation9 + $0x30] ss:$12 sps:$4 sm:$0xff]  }
  0x55   :  { %260 = vmatpush1.bf16.msra.mxu0 %v3262_v9  ;;  %3066 = vmatpush3.bf16.msra.mxu1 %v3263_v10  ;;  %v3679_v33 = vld [vmem:[#allocation9 + $0x34] ss:$12 sps:$4 sm:$0xff]   ;;  %v3686_v36 = vld [vmem:[#allocation9 + $0x4c] ss:$12 sps:$4 sm:$0xff]   ;;  %v3693_v39 = vld [vmem:[#allocation9 + $0x64] ss:$12 sps:$4 sm:$0xff]  }
  0x56   :  { %261 = vmatprep.subr.bf16.mxu0 %v3264_v11  ;;  %3067 = vmatprep.subr.bf16.mxu1 %v3568_v0  ;;  %v3309_v35 = vld [vmem:[#allocation9 + $0x20] ss:$12 sps:$4 sm:$0xff]   ;;  %v3310_v37 = vld [vmem:[#allocation9 + $0x38] ss:$12 sps:$4 sm:$0xff]   ;;  %v3691_v38 = vld [vmem:[#allocation9 + $0x48] ss:$12 sps:$4 sm:$0xff]  }
  0x57   :  { %v3311_v40 = vld [vmem:[#allocation9 + $0x50] ss:$12 sps:$4 sm:$0xff]   ;;  %v3698_v41 = vld [vmem:[#allocation9 + $0x60] ss:$12 sps:$4 sm:$0xff]   ;;  %v3312_v43 = vld [vmem:[#allocation9 + $0x68] ss:$12 sps:$4 sm:$0xff]  }
  0x58   :  { %v3700_v42 = vld [vmem:[#allocation9 + $0x7c] ss:$12 sps:$4 sm:$0xff]   ;;  %v3705_v44 = vld [vmem:[#allocation9 + $0x78] ss:$12 sps:$4 sm:$0xff]   ;;  %v3707_v45 = vld [vmem:[#allocation9 + $0x94] ss:$12 sps:$4 sm:$0xff]  }
  0x59   :  { %262 = vmatpush1.bf16.msra.mxu0 %v3266_v12  ;;  %3068 = vmatpush3.bf16.msra.mxu1 %v3267_v13  ;;  %v3313_v46 = vld [vmem:[#allocation9 + $0x80] ss:$12 sps:$4 sm:$0xff]   ;;  %v3712_v47 = vld [vmem:[#allocation9 + $0x90] ss:$12 sps:$4 sm:$0xff]   ;;  %v3314_v49 = vld [vmem:[#allocation9 + $0x98] ss:$12 sps:$4 sm:$0xff]  }
  0x5a   :  { %263 = vmatprep.subr.bf16.mxu0 %v3268_v14  ;;  %3069 = vmatprep.subr.bf16.mxu1 %v3568_v0  ;;  %v3714_v48 = vld [vmem:[#allocation9 + $0xac] ss:$12 sps:$4 sm:$0xff]   ;;  %v3719_v50 = vld [vmem:[#allocation9 + $0xa8] ss:$12 sps:$4 sm:$0xff]   ;;  %v3315_v52 = vld [vmem:[#allocation9 + $0xb0] ss:$12 sps:$4 sm:$0xff]  }
  0x5b   :  { %v3721_v51 = vld [vmem:[#allocation3] sm:$0x1]  ;;  %v3317_v55 = vld [vmem:[#allocation9 + $0x20] ss:$12 sps:$4 sm:$0xff]   ;;  %v3318_v56 = vld [vmem:[#allocation9 + $0x38] ss:$12 sps:$4 sm:$0xff]  }
  0x5c   :  { %v341_v53 = vpack.c.bf16 %v3721_v51, %v3721_v51  ;;  %v3316_v54 = vld [vmem:[#allocation9 + $0x8] ss:$12 sps:$4 sm:$0xff]   ;;  %v3319_v57 = vld [vmem:[#allocation9 + $0x50] ss:$12 sps:$4 sm:$0xff]   ;;  %v3321_v59 = vld [vmem:[#allocation9 + $0x80] ss:$12 sps:$4 sm:$0xff]  }
  0x5d   :  { %264 = vmatpush1.bf16.msra.mxu0 %v3270_v15  ;;  %3070 = vmatpush3.bf16.msra.mxu1 %v3271_v16  ;;  %v3320_v58 = vld [vmem:[#allocation9 + $0x68] ss:$12 sps:$4 sm:$0xff]   ;;  %v3322_v60 = vld [vmem:[#allocation9 + $0x98] ss:$12 sps:$4 sm:$0xff]   ;;  %v3323_v61 = vld [vmem:[#allocation9 + $0xb0] ss:$12 sps:$4 sm:$0xff]  }
  0x5e   :  { %265 = vmatprep.subr.bf16.mxu0 %v3272_v17  ;;  %3071 = vmatprep.subr.bf16.mxu1 %v3568_v0  ;;  %v113_v63 = vshrl.u32 %v112_v62, 7  ;;  %v110_v3 = vld [vmem:[%s4082_s4] sm:$0x7] }
  0x60   :  { %v3759_v2 = vsub.s32 0, %v113_v63  ;;  %v3764_v4 = vsub.s32 1, %v113_v63  ;;  %v3766_v5 = vsub.s32 2, %v113_v63 }
  0x61   :  { %266 = vmatpush1.bf16.msra.mxu0 %v3274_v18  ;;  %3072 = vmatpush3.bf16.msra.mxu1 %v3275_v19 }
  0x62   :  { %267 = vmatprep.subr.bf16.mxu0 %v3276_v20  ;;  %3073 = vmatprep.subr.bf16.mxu1 %v3568_v0  ;;  %v115_v6 = vrot.slane %v110_v3, %v3759_v2  ;;  %v119_v7 = vrot.slane %v110_v3, %v3764_v4  ;;  %v123_v8 = vrot.slane %v110_v3, %v3766_v5  ;;  %v3571_v20 = vmov 1966171168  }
  0x65   :  { %268 = vmatpush1.bf16.msra.mxu0 %v3278_v21  ;;  %3074 = vmatpush3.bf16.msra.mxu1 %v3279_v22  ;;  %v604_v21 = vunpack.c.l.s4 %v3571_v20  ;;  %v374_v22 = vld [vmem:[%s4083_s5] sm:$0x7] }
  0x66   :  { %269 = vmatprep.subr.bf16.mxu0 %v3280_v23  ;;  %3075 = vmatprep.subr.bf16.mxu1 %v3568_v0  ;;  %v507_v23 = vrot.slane %v374_v22, %v3759_v2  ;;  %v515_v62 = vrot.slane %v374_v22, %v3766_v5  ;;  %v3329_v20 = vld [vmem:[#allocation9 + $0x80] ss:$12 sps:$4 sm:$0xff]  }
  0x69   :  { %270 = vmatpush1.bf16.msra.mxu0 %v3282_v24  ;;  %3076 = vmatpush3.bf16.msra.mxu1 %v3283_v25  ;;  %v605_v24 = vunpack.c.0.s8 %v604_v21  ;;  %v511_v25 = vrot.slane %v374_v22, %v3764_v4  ;;  %v3331_v21 = vld [vmem:[#allocation9 + $0xb0] ss:$12 sps:$4 sm:$0xff]  }
  0x6a   :  { %519 = vmatprep.subr.bf16.mxu0 %v3666_v27  ;;  %3081 = vmatprep.subr.bf16.mxu1 %v3568_v0  ;;  %v674_v22 = vld [vmem:[%s4083_s5] sm:$0x7] }
  0x6c   :  { %288 = vmatmul.mubr.bf16.vlgmr.msra.gmra.mrb[0].mxu0 %v77_v28  ;;  %3078 = vmatmul.mubr.bf16.vlgmr.msra.gmra.mrb[0].mxu1 %v77_v28 }
  0x6d   :  { %520 = vmatpush1.bf16.msra.mxu0 %v3669_v29  ;;  %551 = vmatprep.mubr.bf16.mxu0 %v3569_v1 }
  0x6e   :  { %521 = vmatprep.subr.bf16.mxu0 %v3672_v30  ;;  %3082 = vmatpush3.bf16.msra.mxu1 %v3308_v31 }
  0x6f   :  { %3097 = vmatprep.mubr.msk.bf16.mxu1 %vm3570_vm0, %v3568_v0  ;;  %3083 = vmatprep.subr.bf16.mxu1 %v3568_v0 }
  0x71   :  { %522 = vmatpush1.bf16.msra.mxu0 %v3676_v32 }
  0x72   :  { %523 = vmatprep.subr.bf16.mxu0 %v3679_v33  ;;  %3084 = vmatpush3.bf16.msra.mxu1 %v3309_v35  ;;  %v3776_v35 = vsub.s32 %v605_v24, %v113_v63  ;;  %v811_v24 = vrot.slane %v674_v22, %v3764_v4 }
  0x73   :  { %3085 = vmatprep.subr.bf16.mxu1 %v3568_v0 }
  0x75   :  { %524 = vmatpush1.bf16.msra.mxu0 %v3682_v34 }
  0x76   :  { %525 = vmatprep.subr.bf16.mxu0 %v3686_v36  ;;  %3086 = vmatpush3.bf16.msra.mxu1 %v3310_v37 }
  0x77   :  { %3087 = vmatprep.subr.bf16.mxu1 %v3568_v0 }
  0x79   :  { %526 = vmatpush1.bf16.msra.mxu0 %v3691_v38 }
  0x7a   :  { %527 = vmatprep.subr.bf16.mxu0 %v3693_v39  ;;  %3088 = vmatpush3.bf16.msra.mxu1 %v3311_v40 }
  0x7b   :  { %3089 = vmatprep.subr.bf16.mxu1 %v3568_v0 }
  0x7d   :  { %528 = vmatpush1.bf16.msra.mxu0 %v3698_v41 }
  0x7e   :  { %529 = vmatprep.subr.bf16.mxu0 %v3700_v42  ;;  %3090 = vmatpush3.bf16.msra.mxu1 %v3312_v43 }
  0x7f   :  { %3091 = vmatprep.subr.bf16.mxu1 %v3568_v0 }
  0x81   :  { %530 = vmatpush1.bf16.msra.mxu0 %v3705_v44 }
  0x82   :  { %531 = vmatprep.subr.bf16.mxu0 %v3707_v45  ;;  %3092 = vmatpush3.bf16.msra.mxu1 %v3313_v46 }
  0x83   :  { %3093 = vmatprep.subr.bf16.mxu1 %v3568_v0 }
  0x85   :  { %532 = vmatpush1.bf16.msra.mxu0 %v3712_v47 }
  0x86   :  { %533 = vmatprep.subr.bf16.mxu0 %v3714_v48  ;;  %3094 = vmatpush3.bf16.msra.mxu1 %v3314_v49 }
  0x87   :  { %3095 = vmatprep.subr.bf16.mxu1 %v3568_v0 }
  0x89   :  { %534 = vmatpush1.bf16.msra.mxu0 %v3719_v50 }
  0x8a   :  { %819 = vmatprep.subr.bf16.mxu0 %v3666_v27  ;;  %3096 = vmatpush3.bf16.msra.mxu1 %v3315_v52 }
  0x8b   :  { %3101 = vmatprep.subr.bf16.mxu1 %v3568_v0 }
  0x8c   :  { %552 = vmatmul.mubr.bf16.vlgmr.msra.gmra.mrb[4].mxu0 %v341_v53 }
  0x8d   :  { %820 = vmatpush1.bf16.msra.mxu0 %v3669_v29  ;;  %851 = vmatprep.mubr.bf16.mxu0 %v3569_v1 }
  0x8e   :  { %3098 = vmatmul.mubr.bf16.vlgmr.msra.gmra.mrb[4].mxu1 %v341_v53  ;;  %821 = vmatprep.subr.bf16.mxu0 %v3672_v30 }
  0x8f   :  { %3117 = vmatprep.mubr.msk.bf16.mxu1 %vm3570_vm0, %v3568_v0  ;;  %3102 = vmatpush3.bf16.msra.mxu1 %v3316_v54 }
  0x90   :  { %3103 = vmatprep.subr.bf16.mxu1 %v3568_v0 }
  0x91   :  { %822 = vmatpush1.bf16.msra.mxu0 %v3676_v32 }
  0x92   :  { %823 = vmatprep.subr.bf16.mxu0 %v3679_v33 }
  0x93   :  { %3104 = vmatpush3.bf16.msra.mxu1 %v3317_v55 }
  0x94   :  { %3105 = vmatprep.subr.bf16.mxu1 %v3568_v0 }
  0x95   :  { %824 = vmatpush1.bf16.msra.mxu0 %v3682_v34 }
  0x96   :  { %825 = vmatprep.subr.bf16.mxu0 %v3686_v36 }
  0x97   :  { %3106 = vmatpush3.bf16.msra.mxu1 %v3318_v56 }
  0x98   :  { %3107 = vmatprep.subr.bf16.mxu1 %v3568_v0 }
  0x99   :  { %826 = vmatpush1.bf16.msra.mxu0 %v3691_v38 }
  0x9a   :  { %827 = vmatprep.subr.bf16.mxu0 %v3693_v39 }
  0x9b   :  { %3108 = vmatpush3.bf16.msra.mxu1 %v3319_v57 }
  0x9c   :  { %3109 = vmatprep.subr.bf16.mxu1 %v3568_v0 }
  0x9d   :  { %828 = vmatpush1.bf16.msra.mxu0 %v3698_v41 }
  0x9e   :  { %829 = vmatprep.subr.bf16.mxu0 %v3700_v42 }
  0x9f   :  { %3110 = vmatpush3.bf16.msra.mxu1 %v3320_v58 }
  0xa0   :  { %3111 = vmatprep.subr.bf16.mxu1 %v3568_v0 }
  0xa1   :  { %830 = vmatpush1.bf16.msra.mxu0 %v3705_v44 }
  0xa2   :  { %831 = vmatprep.subr.bf16.mxu0 %v3707_v45 }
  0xa3   :  { %3112 = vmatpush3.bf16.msra.mxu1 %v3321_v59 }
  0xa4   :  { %3113 = vmatprep.subr.bf16.mxu1 %v3568_v0 }
  0xa5   :  { %832 = vmatpush1.bf16.msra.mxu0 %v3712_v47 }
  0xa6   :  { %833 = vmatprep.subr.bf16.mxu0 %v3714_v48 }
  0xa7   :  { %3114 = vmatpush3.bf16.msra.mxu1 %v3322_v60 }
  0xa8   :  { %3115 = vmatprep.subr.bf16.mxu1 %v3568_v0 }
  0xa9   :  { %834 = vmatpush1.bf16.msra.mxu0 %v3719_v50 }
  0xaa   :  { %1119 = vmatprep.subr.bf16.mxu0 %v3666_v27 }
  0xab   :  { %3116 = vmatpush3.bf16.msra.mxu1 %v3323_v61 }
  0xac   :  { %3121 = vmatprep.subr.bf16.mxu1 %v3568_v0 }
 0x13f   :  { %v289_v9 = vpop.f32.mrb[0].mxu0  ;;  %v330_v12 = vpop.f32.mrb[0].mxu1 }
 0x140   :  { %v290_v10 = vadd.f32 %v289_v9, %v115_v6  ;;  %v291_v11 = vpop.f32.mrb[1].mxu0  ;;  %v331_v14 = vadd.f32 %v330_v12, %v123_v8  ;;  %v3079_v16 = vpop.f32.mrb[1].mxu1 }
 0x141   :  { %v292_v13 = vadd.f32 %v291_v11, %v119_v7  ;;  %v293_v15 = vpop.f32.mrb[2].mxu0  ;;  %v333_v18 = vpop.f32.mrb[2].mxu1  ;;  %v3325_v16 = vld [vmem:[#allocation9 + $0x20] ss:$12 sps:$4 sm:$0xff]  }
 0x142   :  { %336 = vst [vmem:[#allocation2] sm:$0xff] %v290_v10  ;;  %v294_v17 = vpop.f32.mrb[3].mxu0  ;;  %338 = vst [vmem:[#allocation2 + $0x10] sm:$0xff] %v331_v14  ;;  %v3080_v19 = vpop.f32.mrb[3].mxu1  ;;  %v3327_v18 = vld [vmem:[#allocation9 + $0x50] ss:$12 sps:$4 sm:$0xff]  }
 0x143   :  { %337 = vst [vmem:[#allocation2 + $0x8] sm:$0xff] %v292_v13  ;;  %v3326_v17 = vld [vmem:[#allocation9 + $0x38] ss:$12 sps:$4 sm:$0xff]   ;;  %v3328_v19 = vld [vmem:[#allocation9 + $0x68] ss:$12 sps:$4 sm:$0xff]  }
 0x14a   :  { %v340_v57 = vld [vmem:[#allocation2] ss:$8 sm:$0x7] }
 0x14b   :  { %v627_v7 = vrot.slane %v340_v57, 2 }
 0x15f   :  { %v553_v26 = vpop.f32.mrb[4].mxu0 }
 0x160   :  { %v554_v28 = vadd.f32 %v553_v26, %v507_v23  ;;  %v555_v31 = vpop.f32.mrb[5].mxu0  ;;  %v807_v23 = vrot.slane %v674_v22, %v3759_v2 }
 0x161   :  { %v556_v37 = vadd.f32 %v555_v31, %v511_v25  ;;  %v557_v40 = vpop.f32.mrb[6].mxu0  ;;  %v594_v43 = vpop.f32.mrb[4].mxu1 }
 0x162   :  { %v558_v46 = vpop.f32.mrb[7].mxu0  ;;  %v3099_v49 = vpop.f32.mrb[5].mxu1  ;;  %v595_v63 = vadd.f32 %v594_v43, %v515_v62 }
 0x163   :  { %v602_v52 = vcombine.low %v554_v28, %v556_v37  ;;  %v597_v53 = vpop.f32.mrb[6].mxu1 }
 0x164   :  { %v3100_v54 = vpop.f32.mrb[7].mxu1 }
 0x165   :  { %v609_v55 = vrot.slane %v602_v52, %v3776_v35 }
 0x167   :  { %v616_v56 = vrot.slane %v609_v55, %v3776_v35 }
 0x169   :  { %v618_v58 = vadd.f32 %v616_v56, %v340_v57  ;;  %v640_v56 = vld [vmem:[#allocation2 + $0x1] ss:$8 sm:$0x7] }
 0x16b   :  { %v2804_v59 = vmul.f32 -1.442695, %v618_v58 }
 0x16d   :  { %3396 = vpow2.f32 %v2804_v59 }
 0x177   :  { %v3397_v60 = vpop.eup %3396 }
 0x178   :  { %v622_v61 = vadd.f32 1.0, %v3397_v60 }
 0x17a   :  { %3398 = vrcp.f32 %v622_v61  ;;  %v815_v61 = vrot.slane %v674_v22, %v3766_v5  ;;  %v940_v22 = vld [vmem:[#allocation2 + $0x2] ss:$8 sm:$0x7] }
 0x184   :  { %v3399_v3 = vpop.eup %3398 }
 0x185   :  { %v625_v6 = vmul.f32 %v3399_v3, %v595_v63  ;;  %v632_v9 = vrot.slane %v3399_v3, 1 }
 0x187   :  { %v629_v8 = vadd.f32 %v627_v7, %v625_v6  ;;  %v634_v10 = vsub.f32 1.0, %v632_v9  ;;  %v636_v13 = vmul.f32 %v632_v9, %v3721_v51  ;;  %v3324_v51 = vld [vmem:[#allocation9 + $0x8] ss:$12 sps:$4 sm:$0xff]   ;;  %v927_v6 = vrot.slane %v640_v56, 2 }
 0x189   :  { %3400 = vtanh.f32 %v629_v8 }
 0x193   :  { %v3401_v11 = vpop.eup %3400 }
 0x194   :  { %v635_v12 = vmul.f32 %v3401_v11, %v634_v10 }
 0x196   :  { %v3782_v14 = vadd.f32 %v636_v13, %v635_v12 }
 0x198   :  { %638 = vst [vmem:[#allocation11] sm:$0x1] %v3782_v14  ;;  %v641_v15 = vpack.c.bf16 %v3782_v14, %v3782_v14 }
 0x19a   :  { %852 = vmatmul.mubr.bf16.vlgmr.msra.gmra.mrb[8].mxu0 %v641_v15  ;;  %3118 = vmatmul.mubr.bf16.vlgmr.msra.gmra.mrb[8].mxu1 %v641_v15 }
 0x19b   :  { %1120 = vmatpush1.bf16.msra.mxu0 %v3669_v29  ;;  %1151 = vmatprep.mubr.bf16.mxu0 %v3569_v1 }
 0x19c   :  { %1121 = vmatprep.subr.bf16.mxu0 %v3672_v30  ;;  %3137 = vmatprep.mubr.msk.bf16.mxu1 %vm3570_vm0, %v3568_v0 }
 0x19d   :  { %3122 = vmatpush3.bf16.msra.mxu1 %v3324_v51 }
 0x19e   :  { %3123 = vmatprep.subr.bf16.mxu1 %v3568_v0 }
 0x19f   :  { %1122 = vmatpush1.bf16.msra.mxu0 %v3676_v32 }
 0x1a0   :  { %1123 = vmatprep.subr.bf16.mxu0 %v3679_v33 }
 0x1a1   :  { %3124 = vmatpush3.bf16.msra.mxu1 %v3325_v16 }
 0x1a2   :  { %3125 = vmatprep.subr.bf16.mxu1 %v3568_v0 }
 0x1a3   :  { %1124 = vmatpush1.bf16.msra.mxu0 %v3682_v34 }
 0x1a4   :  { %1125 = vmatprep.subr.bf16.mxu0 %v3686_v36 }
 0x1a5   :  { %3126 = vmatpush3.bf16.msra.mxu1 %v3326_v17 }
 0x1a6   :  { %3127 = vmatprep.subr.bf16.mxu1 %v3568_v0 }
 0x1a7   :  { %1126 = vmatpush1.bf16.msra.mxu0 %v3691_v38 }
 0x1a8   :  { %1127 = vmatprep.subr.bf16.mxu0 %v3693_v39 }
 0x1a9   :  { %3128 = vmatpush3.bf16.msra.mxu1 %v3327_v18 }
 0x1aa   :  { %3129 = vmatprep.subr.bf16.mxu1 %v3568_v0 }
 0x1ab   :  { %1128 = vmatpush1.bf16.msra.mxu0 %v3698_v41 }
 0x1ac   :  { %1129 = vmatprep.subr.bf16.mxu0 %v3700_v42 }
 0x1ad   :  { %3130 = vmatpush3.bf16.msra.mxu1 %v3328_v19 }
 0x1ae   :  { %3131 = vmatprep.subr.bf16.mxu1 %v3568_v0 }
 0x1af   :  { %1130 = vmatpush1.bf16.msra.mxu0 %v3705_v44 }
 0x1b0   :  { %1131 = vmatprep.subr.bf16.mxu0 %v3707_v45 }
 0x1b1   :  { %3132 = vmatpush3.bf16.msra.mxu1 %v3329_v20 }
 0x1b2   :  { %3133 = vmatprep.subr.bf16.mxu1 %v3568_v0 }
 0x1b3   :  { %1132 = vmatpush1.bf16.msra.mxu0 %v3712_v47 }
 0x1b4   :  { %1133 = vmatprep.subr.bf16.mxu0 %v3714_v48 }
 0x1b7   :  { %1134 = vmatpush1.bf16.msra.mxu0 %v3719_v50 }
 0x1b8   :  { %1419 = vmatprep.subr.bf16.mxu0 %v3666_v27  ;;  %v3330_v27 = vld [vmem:[#allocation9 + $0x98] ss:$12 sps:$4 sm:$0xff]  }
 0x1b9   :  { %3134 = vmatpush3.bf16.msra.mxu1 %v3330_v27 }
 0x1ba   :  { %3135 = vmatprep.subr.bf16.mxu1 %v3568_v0 }
 0x1bd   :  { %3136 = vmatpush3.bf16.msra.mxu1 %v3331_v21 }
 0x1be   :  { %3141 = vmatprep.subr.bf16.mxu1 %v3568_v0 }
 0x26d   :  { %v853_v25 = vpop.f32.mrb[8].mxu0  ;;  %v894_v26 = vpop.f32.mrb[8].mxu1 }
 0x26e   :  { %v854_v28 = vadd.f32 %v853_v25, %v807_v23  ;;  %v855_v31 = vpop.f32.mrb[9].mxu0  ;;  %v3119_v37 = vpop.f32.mrb[9].mxu1  ;;  %v895_v62 = vadd.f32 %v894_v26, %v815_v61  ;;  %v3877_v61 = vld [vmem:[#allocation9 + $0x1c] ss:$12 sps:$4 sm:$0xff]  }
 0x26f   :  { %v856_v40 = vadd.f32 %v855_v31, %v811_v24  ;;  %v857_v43 = vpop.f32.mrb[10].mxu0  ;;  %v897_v46 = vpop.f32.mrb[10].mxu1 }
 0x270   :  { %v858_v49 = vpop.f32.mrb[11].mxu0  ;;  %v3120_v52 = vpop.f32.mrb[11].mxu1  ;;  %v1227_v43 = vrot.slane %v940_v22, 2 }
 0x271   :  { %v902_v53 = vcombine.low %v854_v28, %v856_v40 }
 0x273   :  { %v909_v54 = vrot.slane %v902_v53, %v3776_v35 }
 0x275   :  { %v916_v55 = vrot.slane %v909_v54, %v3776_v35 }
 0x277   :  { %v918_v57 = vadd.f32 %v916_v55, %v640_v56 }
 0x279   :  { %v2829_v58 = vmul.f32 -1.442695, %v918_v57 }
 0x27b   :  { %3402 = vpow2.f32 %v2829_v58  ;;  %v3871_v58 = vld [vmem:[#allocation9 + $0x4] ss:$12 sps:$4 sm:$0xff]  }
 0x285   :  { %v3403_v59 = vpop.eup %3402 }
 0x286   :  { %v922_v60 = vadd.f32 1.0, %v3403_v59  ;;  %v3873_v59 = vld [vmem:[#allocation9] ss:$12 sps:$4 sm:$0xff]  }
 0x288   :  { %3404 = vrcp.f32 %v922_v60  ;;  %v3343_v60 = vld [vmem:[#allocation9 + $0x8] ss:$12 sps:$4 sm:$0xff]  }
 0x292   :  { %v3405_v63 = vpop.eup %3404 }
 0x293   :  { %v925_v3 = vmul.f32 %v3405_v63, %v895_v62  ;;  %v932_v8 = vrot.slane %v3405_v63, 1  ;;  %v3880_v62 = vld [vmem:[#allocation9 + $0x18] ss:$12 sps:$4 sm:$0xff]   ;;  %v3347_v63 = vld [vmem:[#allocation9 + $0x20] ss:$12 sps:$4 sm:$0xff]  }
 0x295   :  { %v929_v7 = vadd.f32 %v927_v6, %v925_v3  ;;  %v934_v9 = vsub.f32 1.0, %v932_v8  ;;  %v936_v12 = vmul.f32 %v932_v8, %v3782_v14  ;;  %v3884_v3 = vld [vmem:[#allocation9 + $0x34] ss:$12 sps:$4 sm:$0xff]   ;;  %v3887_v6 = vld [vmem:[#allocation9 + $0x30] ss:$12 sps:$4 sm:$0xff]  }
 0x296   :  { %v3891_v8 = vld [vmem:[#allocation9 + $0x4c] ss:$12 sps:$4 sm:$0xff]  }
 0x297   :  { %3406 = vtanh.f32 %v929_v7  ;;  %v3351_v7 = vld [vmem:[#allocation9 + $0x38] ss:$12 sps:$4 sm:$0xff]  }
 0x2a1   :  { %v3407_v10 = vpop.eup %3406 }
 0x2a2   :  { %v935_v11 = vmul.f32 %v3407_v10, %v934_v9  ;;  %v3894_v9 = vld [vmem:[#allocation9 + $0x48] ss:$12 sps:$4 sm:$0xff]   ;;  %v3355_v10 = vld [vmem:[#allocation9 + $0x50] ss:$12 sps:$4 sm:$0xff]  }
 0x2a4   :  { %v3823_v13 = vadd.f32 %v936_v12, %v935_v11  ;;  %v3898_v11 = vld [vmem:[#allocation9 + $0x60] ss:$12 sps:$4 sm:$0xff]   ;;  %v3900_v12 = vld [vmem:[#allocation9 + $0x64] ss:$12 sps:$4 sm:$0xff]  }
 0x2a6   :  { %938 = vst [vmem:[#allocation11 + $0x1] sm:$0x1] %v3823_v13  ;;  %v941_v15 = vpack.c.bf16 %v3823_v13, %v3823_v13 }
 0x2a8   :  { %1152 = vmatmul.mubr.bf16.vlgmr.msra.gmra.mrb[12].mxu0 %v941_v15  ;;  %3138 = vmatmul.mubr.bf16.vlgmr.msra.gmra.mrb[12].mxu1 %v941_v15  ;;  %v3903_v15 = vld [vmem:[#allocation9 + $0x7c] ss:$12 sps:$4 sm:$0xff]  }
 0x2a9   :  { %1420 = vmatpush1.bf16.msra.mxu0 %v3669_v29  ;;  %1451 = vmatprep.mubr.bf16.mxu0 %v3569_v1  ;;  %v3332_v29 = vld [vmem:[#allocation9 + $0x8] ss:$12 sps:$4 sm:$0xff]  }
 0x2aa   :  { %1421 = vmatprep.subr.bf16.mxu0 %v3672_v30  ;;  %3157 = vmatprep.mubr.msk.bf16.mxu1 %vm3570_vm0, %v3568_v0  ;;  %v3333_v30 = vld [vmem:[#allocation9 + $0x20] ss:$12 sps:$4 sm:$0xff]  }
 0x2ab   :  { %3142 = vmatpush3.bf16.msra.mxu1 %v3332_v29  ;;  %v3907_v29 = vld [vmem:[#allocation9 + $0x78] ss:$12 sps:$4 sm:$0xff]  }
 0x2ac   :  { %3143 = vmatprep.subr.bf16.mxu1 %v3568_v0 }
 0x2ad   :  { %1422 = vmatpush1.bf16.msra.mxu0 %v3676_v32  ;;  %v3334_v32 = vld [vmem:[#allocation9 + $0x38] ss:$12 sps:$4 sm:$0xff]  }
 0x2ae   :  { %1423 = vmatprep.subr.bf16.mxu0 %v3679_v33  ;;  %v3335_v33 = vld [vmem:[#allocation9 + $0x50] ss:$12 sps:$4 sm:$0xff]  }
 0x2af   :  { %3144 = vmatpush3.bf16.msra.mxu1 %v3333_v30  ;;  %v3363_v30 = vld [vmem:[#allocation9 + $0x80] ss:$12 sps:$4 sm:$0xff]  }
 0x2b0   :  { %3145 = vmatprep.subr.bf16.mxu1 %v3568_v0 }
 0x2b1   :  { %1424 = vmatpush1.bf16.msra.mxu0 %v3682_v34  ;;  %v3336_v34 = vld [vmem:[#allocation9 + $0x68] ss:$12 sps:$4 sm:$0xff]  }
 0x2b2   :  { %1425 = vmatprep.subr.bf16.mxu0 %v3686_v36  ;;  %v3337_v36 = vld [vmem:[#allocation9 + $0x80] ss:$12 sps:$4 sm:$0xff]  }
 0x2b3   :  { %3146 = vmatpush3.bf16.msra.mxu1 %v3334_v32  ;;  %v3911_v32 = vld [vmem:[#allocation9 + $0x94] ss:$12 sps:$4 sm:$0xff]  }
 0x2b4   :  { %3147 = vmatprep.subr.bf16.mxu1 %v3568_v0 }
 0x2b5   :  { %1426 = vmatpush1.bf16.msra.mxu0 %v3691_v38  ;;  %v3338_v38 = vld [vmem:[#allocation9 + $0x98] ss:$12 sps:$4 sm:$0xff]  }
 0x2b6   :  { %1427 = vmatprep.subr.bf16.mxu0 %v3693_v39  ;;  %v3339_v39 = vld [vmem:[#allocation9 + $0xb0] ss:$12 sps:$4 sm:$0xff]  }
 0x2b7   :  { %3148 = vmatpush3.bf16.msra.mxu1 %v3335_v33  ;;  %v3914_v33 = vld [vmem:[#allocation9 + $0x90] ss:$12 sps:$4 sm:$0xff]  }
 0x2b8   :  { %3149 = vmatprep.subr.bf16.mxu1 %v3568_v0 }
 0x2b9   :  { %1428 = vmatpush1.bf16.msra.mxu0 %v3698_v41  ;;  %v974_v41 = vld [vmem:[%s4083_s5] sm:$0x7] }
 0x2ba   :  { %1429 = vmatprep.subr.bf16.mxu0 %v3700_v42  ;;  %v1107_v42 = vrot.slane %v974_v41, %v3759_v2  ;;  %v1115_v28 = vrot.slane %v974_v41, %v3766_v5 }
 0x2bb   :  { %3150 = vmatpush3.bf16.msra.mxu1 %v3336_v34  ;;  %v3367_v34 = vld [vmem:[#allocation9 + $0x98] ss:$12 sps:$4 sm:$0xff]  }
 0x2bc   :  { %3151 = vmatprep.subr.bf16.mxu1 %v3568_v0 }
 0x2bd   :  { %1430 = vmatpush1.bf16.msra.mxu0 %v3705_v44  ;;  %v1111_v44 = vrot.slane %v974_v41, %v3764_v4  ;;  %v1274_v41 = vld [vmem:[%s4083_s5] sm:$0x7] }
 0x2be   :  { %1431 = vmatprep.subr.bf16.mxu0 %v3707_v45 }
 0x2bf   :  { %3152 = vmatpush3.bf16.msra.mxu1 %v3337_v36  ;;  %v3918_v36 = vld [vmem:[#allocation9 + $0xac] ss:$12 sps:$4 sm:$0xff]  }
 0x2c0   :  { %3153 = vmatprep.subr.bf16.mxu1 %v3568_v0 }
 0x2c1   :  { %1432 = vmatpush1.bf16.msra.mxu0 %v3712_v47 }
 0x2c2   :  { %1433 = vmatprep.subr.bf16.mxu0 %v3714_v48 }
 0x2c3   :  { %3154 = vmatpush3.bf16.msra.mxu1 %v3338_v38  ;;  %v3921_v38 = vld [vmem:[#allocation9 + $0xa8] ss:$12 sps:$4 sm:$0xff]  }
 0x2c4   :  { %3155 = vmatprep.subr.bf16.mxu1 %v3568_v0 }
 0x2c5   :  { %1434 = vmatpush1.bf16.msra.mxu0 %v3719_v50 }
 0x2c6   :  { %1719 = vmatprep.subr.bf16.mxu0 %v3871_v58 }
 0x2c7   :  { %3156 = vmatpush3.bf16.msra.mxu1 %v3339_v39  ;;  %v3371_v39 = vld [vmem:[#allocation9 + $0xb0] ss:$12 sps:$4 sm:$0xff]  }
 0x2c8   :  { %3161 = vmatprep.subr.bf16.mxu1 %v3568_v0 }
 0x37b   :  { %v1153_v45 = vpop.f32.mrb[12].mxu0  ;;  %v1194_v47 = vpop.f32.mrb[12].mxu1 }
 0x37c   :  { %v1154_v48 = vadd.f32 %v1153_v45, %v1107_v42  ;;  %v1155_v50 = vpop.f32.mrb[13].mxu0  ;;  %v3139_v14 = vpop.f32.mrb[13].mxu1  ;;  %v1195_v31 = vadd.f32 %v1194_v47, %v1115_v28  ;;  %v1407_v42 = vrot.slane %v1274_v41, %v3759_v2  ;;  %v1415_v28 = vrot.slane %v1274_v41, %v3766_v5 }
 0x37d   :  { %v1156_v51 = vadd.f32 %v1155_v50, %v1111_v44  ;;  %v1157_v16 = vpop.f32.mrb[14].mxu0  ;;  %v1197_v17 = vpop.f32.mrb[14].mxu1  ;;  %v1411_v44 = vrot.slane %v1274_v41, %v3764_v4  ;;  %v1574_v41 = vld [vmem:[%s4083_s5] sm:$0x7] }
 0x37e   :  { %v1158_v18 = vpop.f32.mrb[15].mxu0  ;;  %v3140_v19 = vpop.f32.mrb[15].mxu1 }
 0x37f   :  { %v1202_v20 = vcombine.low %v1154_v48, %v1156_v51 }
 0x381   :  { %v1209_v27 = vrot.slane %v1202_v20, %v3776_v35 }
 0x383   :  { %v1216_v21 = vrot.slane %v1209_v27, %v3776_v35 }
 0x385   :  { %v1218_v23 = vadd.f32 %v1216_v21, %v940_v22  ;;  %v1240_v22 = vld [vmem:[#allocation2 + $0x3] ss:$8 sm:$0x7] }
 0x387   :  { %v2854_v24 = vmul.f32 -1.442695, %v1218_v23 }
 0x389   :  { %3408 = vpow2.f32 %v2854_v24 }
 0x393   :  { %v3409_v25 = vpop.eup %3408 }
 0x394   :  { %v1222_v26 = vadd.f32 1.0, %v3409_v25 }
 0x396   :  { %3410 = vrcp.f32 %v1222_v26 }
 0x3a0   :  { %v3411_v37 = vpop.eup %3410 }
 0x3a1   :  { %v1225_v40 = vmul.f32 %v3411_v37, %v1195_v31  ;;  %v1232_v49 = vrot.slane %v3411_v37, 1 }
 0x3a3   :  { %v1229_v46 = vadd.f32 %v1227_v43, %v1225_v40  ;;  %v1234_v52 = vsub.f32 1.0, %v1232_v49  ;;  %v1236_v55 = vmul.f32 %v1232_v49, %v3823_v13  ;;  %v3359_v13 = vld [vmem:[#allocation9 + $0x68] ss:$12 sps:$4 sm:$0xff]   ;;  %v1527_v43 = vrot.slane %v1240_v22, 2 }
 0x3a5   :  { %3412 = vtanh.f32 %v1229_v46 }
 0x3af   :  { %v3413_v53 = vpop.eup %3412 }
 0x3b0   :  { %v1235_v54 = vmul.f32 %v3413_v53, %v1234_v52 }
 0x3b2   :  { %v3863_v56 = vadd.f32 %v1236_v55, %v1235_v54 }
 0x3b4   :  { %1238 = vst [vmem:[#allocation11 + $0x2] sm:$0x1] %v3863_v56  ;;  %v1241_v57 = vpack.c.bf16 %v3863_v56, %v3863_v56 }
 0x3b6   :  { %1452 = vmatmul.mubr.bf16.vlgmr.msra.gmra.mrb[16].mxu0 %v1241_v57  ;;  %3158 = vmatmul.mubr.bf16.vlgmr.msra.gmra.mrb[16].mxu1 %v1241_v57 }
 0x3b7   :  { %1751 = vmatprep.mubr.bf16.mxu0 %v3569_v1  ;;  %3177 = vmatprep.mubr.msk.bf16.mxu1 %vm3570_vm0, %v3568_v0 }
 0x3b8   :  { %1720 = vmatpush1.bf16.msra.mxu0 %v3873_v59  ;;  %3162 = vmatpush3.bf16.msra.mxu1 %v3343_v60 }
 0x3b9   :  { %3163 = vmatprep.subr.bf16.mxu1 %v3568_v0  ;;  %1721 = vmatprep.subr.bf16.mxu0 %v3877_v61 }
 0x3bc   :  { %1722 = vmatpush1.bf16.msra.mxu0 %v3880_v62  ;;  %3164 = vmatpush3.bf16.msra.mxu1 %v3347_v63  ;;  %v3373_v63 = vld [vmem:[#allocation9 + $0x20] ss:$12 sps:$4 sm:$0xff]  }
 0x3bd   :  { %3165 = vmatprep.subr.bf16.mxu1 %v3568_v0  ;;  %1723 = vmatprep.subr.bf16.mxu0 %v3884_v3 }
 0x3c0   :  { %1724 = vmatpush1.bf16.msra.mxu0 %v3887_v6  ;;  %3166 = vmatpush3.bf16.msra.mxu1 %v3351_v7  ;;  %v3374_v7 = vld [vmem:[#allocation9 + $0x38] ss:$12 sps:$4 sm:$0xff]  }
 0x3c1   :  { %3167 = vmatprep.subr.bf16.mxu1 %v3568_v0  ;;  %1725 = vmatprep.subr.bf16.mxu0 %v3891_v8 }
 0x3c4   :  { %1726 = vmatpush1.bf16.msra.mxu0 %v3894_v9  ;;  %3168 = vmatpush3.bf16.msra.mxu1 %v3355_v10  ;;  %v3375_v10 = vld [vmem:[#allocation9 + $0x50] ss:$12 sps:$4 sm:$0xff]  }
 0x3c5   :  { %3169 = vmatprep.subr.bf16.mxu1 %v3568_v0  ;;  %1727 = vmatprep.subr.bf16.mxu0 %v3900_v12 }
 0x3c8   :  { %1728 = vmatpush1.bf16.msra.mxu0 %v3898_v11  ;;  %3170 = vmatpush3.bf16.msra.mxu1 %v3359_v13  ;;  %v3376_v13 = vld [vmem:[#allocation9 + $0x68] ss:$12 sps:$4 sm:$0xff]  }
 0x3c9   :  { %1729 = vmatprep.subr.bf16.mxu0 %v3903_v15  ;;  %3171 = vmatprep.subr.bf16.mxu1 %v3568_v0 }
 0x3cc   :  { %1730 = vmatpush1.bf16.msra.mxu0 %v3907_v29  ;;  %3172 = vmatpush3.bf16.msra.mxu1 %v3363_v30  ;;  %v3377_v30 = vld [vmem:[#allocation9 + $0x80] ss:$12 sps:$4 sm:$0xff]  }
 0x3cd   :  { %1731 = vmatprep.subr.bf16.mxu0 %v3911_v32  ;;  %3173 = vmatprep.subr.bf16.mxu1 %v3568_v0 }
 0x3d0   :  { %1732 = vmatpush1.bf16.msra.mxu0 %v3914_v33  ;;  %3174 = vmatpush3.bf16.msra.mxu1 %v3367_v34  ;;  %v3378_v34 = vld [vmem:[#allocation9 + $0x98] ss:$12 sps:$4 sm:$0xff]  }
 0x3d1   :  { %1733 = vmatprep.subr.bf16.mxu0 %v3918_v36  ;;  %3175 = vmatprep.subr.bf16.mxu1 %v3568_v0 }
 0x3d4   :  { %1734 = vmatpush1.bf16.msra.mxu0 %v3921_v38  ;;  %3176 = vmatpush3.bf16.msra.mxu1 %v3371_v39  ;;  %v3379_v39 = vld [vmem:[#allocation9 + $0xb0] ss:$12 sps:$4 sm:$0xff]  }
 0x3d5   :  { %2019 = vmatprep.subr.bf16.mxu0 %v3871_v58  ;;  %3181 = vmatprep.subr.bf16.mxu1 %v3568_v0 }
 0x489   :  { %v1453_v45 = vpop.f32.mrb[16].mxu0  ;;  %v1494_v47 = vpop.f32.mrb[16].mxu1 }
 0x48a   :  { %v1454_v48 = vadd.f32 %v1453_v45, %v1407_v42  ;;  %v1455_v50 = vpop.f32.mrb[17].mxu0  ;;  %v3159_v14 = vpop.f32.mrb[17].mxu1  ;;  %v1495_v31 = vadd.f32 %v1494_v47, %v1415_v28  ;;  %v1707_v42 = vrot.slane %v1574_v41, %v3759_v2  ;;  %v1715_v28 = vrot.slane %v1574_v41, %v3766_v5 }
 0x48b   :  { %v1456_v51 = vadd.f32 %v1455_v50, %v1411_v44  ;;  %v1457_v16 = vpop.f32.mrb[18].mxu0  ;;  %v1497_v17 = vpop.f32.mrb[18].mxu1  ;;  %v1711_v44 = vrot.slane %v1574_v41, %v3764_v4 }
 0x48c   :  { %v1458_v18 = vpop.f32.mrb[19].mxu0  ;;  %v3160_v19 = vpop.f32.mrb[19].mxu1 }
 0x48d   :  { %v1502_v20 = vcombine.low %v1454_v48, %v1456_v51 }
 0x48f   :  { %v1509_v27 = vrot.slane %v1502_v20, %v3776_v35 }
 0x491   :  { %v1516_v21 = vrot.slane %v1509_v27, %v3776_v35 }
 0x493   :  { %v1518_v23 = vadd.f32 %v1516_v21, %v1240_v22  ;;  %v1540_v22 = vld [vmem:[#allocation2 + $0x4] ss:$8 sm:$0x7] }
 0x495   :  { %v2879_v24 = vmul.f32 -1.442695, %v1518_v23 }
 0x497   :  { %3414 = vpow2.f32 %v2879_v24 }
 0x4a1   :  { %v3415_v25 = vpop.eup %3414 }
 0x4a2   :  { %v1522_v26 = vadd.f32 1.0, %v3415_v25 }
 0x4a4   :  { %3416 = vrcp.f32 %v1522_v26 }
 0x4ae   :  { %v3417_v37 = vpop.eup %3416 }
 0x4af   :  { %v1525_v40 = vmul.f32 %v3417_v37, %v1495_v31  ;;  %v1532_v49 = vrot.slane %v3417_v37, 1 }
 0x4b1   :  { %v1529_v46 = vadd.f32 %v1527_v43, %v1525_v40  ;;  %v1534_v52 = vsub.f32 1.0, %v1532_v49  ;;  %v1536_v55 = vmul.f32 %v1532_v49, %v3863_v56  ;;  %v3372_v56 = vld [vmem:[#allocation9 + $0x8] ss:$12 sps:$4 sm:$0xff]   ;;  %v1827_v43 = vrot.slane %v1540_v22, 2 }
 0x4b3   :  { %3418 = vtanh.f32 %v1529_v46 }
 0x4bd   :  { %v3419_v53 = vpop.eup %3418 }
 0x4be   :  { %v1535_v54 = vmul.f32 %v3419_v53, %v1534_v52 }
 0x4c0   :  { %v3937_v57 = vadd.f32 %v1536_v55, %v1535_v54 }
 0x4c2   :  { %1538 = vst [vmem:[#allocation11 + $0x3] sm:$0x1] %v3937_v57  ;;  %v1541_v60 = vpack.c.bf16 %v3937_v57, %v3937_v57 }
 0x4c4   :  { %1752 = vmatmul.mubr.bf16.vlgmr.msra.gmra.mrb[20].mxu0 %v1541_v60  ;;  %3178 = vmatmul.mubr.bf16.vlgmr.msra.gmra.mrb[20].mxu1 %v1541_v60 }
 0x4c5   :  { %2020 = vmatpush1.bf16.msra.mxu0 %v3873_v59  ;;  %2051 = vmatprep.mubr.bf16.mxu0 %v3569_v1 }
 0x4c6   :  { %2021 = vmatprep.subr.bf16.mxu0 %v3877_v61  ;;  %3197 = vmatprep.mubr.msk.bf16.mxu1 %vm3570_vm0, %v3568_v0 }
 0x4c7   :  { %3182 = vmatpush3.bf16.msra.mxu1 %v3372_v56 }
 0x4c8   :  { %3183 = vmatprep.subr.bf16.mxu1 %v3568_v0 }
 0x4c9   :  { %2022 = vmatpush1.bf16.msra.mxu0 %v3880_v62 }
 0x4ca   :  { %2023 = vmatprep.subr.bf16.mxu0 %v3884_v3 }
 0x4cb   :  { %3184 = vmatpush3.bf16.msra.mxu1 %v3373_v63  ;;  %v3381_v63 = vld [vmem:[#allocation9 + $0x20] ss:$12 sps:$4 sm:$0xff]  }
 0x4cc   :  { %3185 = vmatprep.subr.bf16.mxu1 %v3568_v0 }
 0x4cd   :  { %2024 = vmatpush1.bf16.msra.mxu0 %v3887_v6 }
 0x4ce   :  { %2025 = vmatprep.subr.bf16.mxu0 %v3891_v8 }
 0x4cf   :  { %3186 = vmatpush3.bf16.msra.mxu1 %v3374_v7  ;;  %v3382_v7 = vld [vmem:[#allocation9 + $0x38] ss:$12 sps:$4 sm:$0xff]  }
 0x4d0   :  { %3187 = vmatprep.subr.bf16.mxu1 %v3568_v0 }
 0x4d1   :  { %2026 = vmatpush1.bf16.msra.mxu0 %v3894_v9 }
 0x4d2   :  { %2027 = vmatprep.subr.bf16.mxu0 %v3900_v12 }
 0x4d3   :  { %3188 = vmatpush3.bf16.msra.mxu1 %v3375_v10  ;;  %v3383_v10 = vld [vmem:[#allocation9 + $0x50] ss:$12 sps:$4 sm:$0xff]  }
 0x4d4   :  { %3189 = vmatprep.subr.bf16.mxu1 %v3568_v0 }
 0x4d5   :  { %2028 = vmatpush1.bf16.msra.mxu0 %v3898_v11 }
 0x4d6   :  { %2029 = vmatprep.subr.bf16.mxu0 %v3903_v15 }
 0x4d7   :  { %3190 = vmatpush3.bf16.msra.mxu1 %v3376_v13  ;;  %v3384_v13 = vld [vmem:[#allocation9 + $0x68] ss:$12 sps:$4 sm:$0xff]  }
 0x4d8   :  { %3191 = vmatprep.subr.bf16.mxu1 %v3568_v0 }
 0x4d9   :  { %2030 = vmatpush1.bf16.msra.mxu0 %v3907_v29 }
 0x4da   :  { %2031 = vmatprep.subr.bf16.mxu0 %v3911_v32 }
 0x4db   :  { %3192 = vmatpush3.bf16.msra.mxu1 %v3377_v30  ;;  %v3385_v30 = vld [vmem:[#allocation9 + $0x80] ss:$12 sps:$4 sm:$0xff]  }
 0x4dc   :  { %3193 = vmatprep.subr.bf16.mxu1 %v3568_v0 }
 0x4dd   :  { %2032 = vmatpush1.bf16.msra.mxu0 %v3914_v33 }
 0x4de   :  { %2033 = vmatprep.subr.bf16.mxu0 %v3918_v36 }
 0x4df   :  { %3194 = vmatpush3.bf16.msra.mxu1 %v3378_v34  ;;  %v3387_v34 = vld [vmem:[#allocation9 + $0xb0] ss:$12 sps:$4 sm:$0xff]  }
 0x4e0   :  { %3195 = vmatprep.subr.bf16.mxu1 %v3568_v0 }
 0x4e1   :  { %2034 = vmatpush1.bf16.msra.mxu0 %v3921_v38 }
 0x4e2   :  { %2319 = vmatprep.subr.bf16.mxu0 %v3871_v58 }
 0x4e3   :  { %3196 = vmatpush3.bf16.msra.mxu1 %v3379_v39  ;;  %v1874_v39 = vld [vmem:[%s4083_s5] sm:$0x7] }
 0x4e4   :  { %3201 = vmatprep.subr.bf16.mxu1 %v3568_v0  ;;  %v2007_v41 = vrot.slane %v1874_v39, %v3759_v2 }
 0x597   :  { %v1753_v45 = vpop.f32.mrb[20].mxu0  ;;  %v1794_v47 = vpop.f32.mrb[20].mxu1 }
 0x598   :  { %v1754_v48 = vadd.f32 %v1753_v45, %v1707_v42  ;;  %v1755_v50 = vpop.f32.mrb[21].mxu0  ;;  %v3179_v14 = vpop.f32.mrb[21].mxu1  ;;  %v1795_v31 = vadd.f32 %v1794_v47, %v1715_v28  ;;  %v2011_v42 = vrot.slane %v1874_v39, %v3764_v4 }
 0x599   :  { %v1756_v51 = vadd.f32 %v1755_v50, %v1711_v44  ;;  %v1757_v16 = vpop.f32.mrb[22].mxu0  ;;  %v1797_v17 = vpop.f32.mrb[22].mxu1 }
 0x59a   :  { %v1758_v18 = vpop.f32.mrb[23].mxu0  ;;  %v3180_v19 = vpop.f32.mrb[23].mxu1 }
 0x59b   :  { %v1802_v20 = vcombine.low %v1754_v48, %v1756_v51 }
 0x59d   :  { %v1809_v27 = vrot.slane %v1802_v20, %v3776_v35 }
 0x59f   :  { %v1816_v21 = vrot.slane %v1809_v27, %v3776_v35 }
 0x5a1   :  { %v1818_v23 = vadd.f32 %v1816_v21, %v1540_v22  ;;  %v1840_v21 = vld [vmem:[#allocation2 + $0x5] ss:$8 sm:$0x7] }
 0x5a3   :  { %v2904_v24 = vmul.f32 -1.442695, %v1818_v23 }
 0x5a5   :  { %3420 = vpow2.f32 %v2904_v24 }
 0x5af   :  { %v3421_v25 = vpop.eup %3420 }
 0x5b0   :  { %v1822_v26 = vadd.f32 1.0, %v3421_v25 }
 0x5b2   :  { %3422 = vrcp.f32 %v1822_v26  ;;  %v2015_v26 = vrot.slane %v1874_v39, %v3766_v5 }
 0x5bc   :  { %v3423_v37 = vpop.eup %3422 }
 0x5bd   :  { %v1825_v40 = vmul.f32 %v3423_v37, %v1795_v31  ;;  %v1832_v49 = vrot.slane %v3423_v37, 1 }
 0x5bf   :  { %v1829_v46 = vadd.f32 %v1827_v43, %v1825_v40  ;;  %v1834_v52 = vsub.f32 1.0, %v1832_v49  ;;  %v1836_v55 = vmul.f32 %v1832_v49, %v3937_v57  ;;  %v3380_v57 = vld [vmem:[#allocation9 + $0x8] ss:$12 sps:$4 sm:$0xff]   ;;  %v2127_v40 = vrot.slane %v1840_v21, 2 }
 0x5c1   :  { %3424 = vtanh.f32 %v1829_v46 }
 0x5cb   :  { %v3425_v53 = vpop.eup %3424 }
 0x5cc   :  { %v1835_v54 = vmul.f32 %v3425_v53, %v1834_v52 }
 0x5ce   :  { %v3978_v60 = vadd.f32 %v1836_v55, %v1835_v54 }
 0x5d0   :  { %1838 = vst [vmem:[#allocation11 + $0x4] sm:$0x1] %v3978_v60  ;;  %v1841_v56 = vpack.c.bf16 %v3978_v60, %v3978_v60 }
 0x5d2   :  { %2052 = vmatmul.mubr.bf16.vlgmr.msra.gmra.mrb[24].mxu0 %v1841_v56  ;;  %3198 = vmatmul.mubr.bf16.vlgmr.msra.gmra.mrb[24].mxu1 %v1841_v56 }
 0x5d3   :  { %2320 = vmatpush1.bf16.msra.mxu0 %v3873_v59  ;;  %2351 = vmatprep.mubr.bf16.mxu0 %v3569_v1 }
 0x5d4   :  { %2321 = vmatprep.subr.bf16.mxu0 %v3877_v61  ;;  %3217 = vmatprep.mubr.msk.bf16.mxu1 %vm3570_vm0, %v3568_v0 }
 0x5d5   :  { %3202 = vmatpush3.bf16.msra.mxu1 %v3380_v57 }
 0x5d6   :  { %3203 = vmatprep.subr.bf16.mxu1 %v3568_v0 }
 0x5d7   :  { %2322 = vmatpush1.bf16.msra.mxu0 %v3880_v62 }
 0x5d8   :  { %2323 = vmatprep.subr.bf16.mxu0 %v3884_v3 }
 0x5d9   :  { %3204 = vmatpush3.bf16.msra.mxu1 %v3381_v63 }
 0x5da   :  { %3205 = vmatprep.subr.bf16.mxu1 %v3568_v0 }
 0x5db   :  { %2324 = vmatpush1.bf16.msra.mxu0 %v3887_v6 }
 0x5dc   :  { %2325 = vmatprep.subr.bf16.mxu0 %v3891_v8 }
 0x5dd   :  { %3206 = vmatpush3.bf16.msra.mxu1 %v3382_v7 }
 0x5de   :  { %3207 = vmatprep.subr.bf16.mxu1 %v3568_v0 }
 0x5df   :  { %2326 = vmatpush1.bf16.msra.mxu0 %v3894_v9 }
 0x5e0   :  { %2327 = vmatprep.subr.bf16.mxu0 %v3900_v12 }
 0x5e1   :  { %3208 = vmatpush3.bf16.msra.mxu1 %v3383_v10 }
 0x5e2   :  { %3209 = vmatprep.subr.bf16.mxu1 %v3568_v0 }
 0x5e3   :  { %2328 = vmatpush1.bf16.msra.mxu0 %v3898_v11 }
 0x5e4   :  { %2329 = vmatprep.subr.bf16.mxu0 %v3903_v15 }
 0x5e5   :  { %3210 = vmatpush3.bf16.msra.mxu1 %v3384_v13 }
 0x5e6   :  { %3211 = vmatprep.subr.bf16.mxu1 %v3568_v0 }
 0x5e7   :  { %2330 = vmatpush1.bf16.msra.mxu0 %v3907_v29 }
 0x5e8   :  { %2331 = vmatprep.subr.bf16.mxu0 %v3911_v32 }
 0x5e9   :  { %3212 = vmatpush3.bf16.msra.mxu1 %v3385_v30 }
 0x5ea   :  { %3213 = vmatprep.subr.bf16.mxu1 %v3568_v0 }
 0x5eb   :  { %2332 = vmatpush1.bf16.msra.mxu0 %v3914_v33 }
 0x5ec   :  { %2333 = vmatprep.subr.bf16.mxu0 %v3918_v36 }
 0x5ef   :  { %2334 = vmatpush1.bf16.msra.mxu0 %v3921_v38 }
 0x5f0   :  { %2619 = vmatprep.subr.bf16.mxu0 %v3871_v58  ;;  %v3386_v58 = vld [vmem:[#allocation9 + $0x98] ss:$12 sps:$4 sm:$0xff]  }
 0x5f1   :  { %3214 = vmatpush3.bf16.msra.mxu1 %v3386_v58  ;;  %v2140_v58 = vld [vmem:[#allocation2 + $0x6] ss:$8 sm:$0x7] }
 0x5f2   :  { %3215 = vmatprep.subr.bf16.mxu1 %v3568_v0 }
 0x5f5   :  { %3216 = vmatpush3.bf16.msra.mxu1 %v3387_v34 }
 0x5f6   :  { %3221 = vmatprep.subr.bf16.mxu1 %v3568_v0 }
 0x6a5   :  { %v2053_v44 = vpop.f32.mrb[24].mxu0  ;;  %v2094_v45 = vpop.f32.mrb[24].mxu1 }
 0x6a6   :  { %v2054_v47 = vadd.f32 %v2053_v44, %v2007_v41  ;;  %v2055_v48 = vpop.f32.mrb[25].mxu0  ;;  %v3199_v50 = vpop.f32.mrb[25].mxu1  ;;  %v2095_v28 = vadd.f32 %v2094_v45, %v2015_v26 }
 0x6a7   :  { %v2056_v14 = vadd.f32 %v2055_v48, %v2011_v42  ;;  %v2057_v51 = vpop.f32.mrb[26].mxu0  ;;  %v2097_v16 = vpop.f32.mrb[26].mxu1  ;;  %v2427_v50 = vrot.slane %v2140_v58, 2 }
 0x6a8   :  { %v2058_v17 = vpop.f32.mrb[27].mxu0  ;;  %v3200_v18 = vpop.f32.mrb[27].mxu1 }
 0x6a9   :  { %v2102_v19 = vcombine.low %v2054_v47, %v2056_v14 }
 0x6ab   :  { %v2109_v20 = vrot.slane %v2102_v19, %v3776_v35 }
 0x6ad   :  { %v2116_v27 = vrot.slane %v2109_v20, %v3776_v35 }
 0x6af   :  { %v2118_v22 = vadd.f32 %v2116_v27, %v1840_v21  ;;  %v2474_v21 = vld [vmem:[%s4083_s5] sm:$0x7] }
 0x6b1   :  { %v2929_v23 = vmul.f32 -1.442695, %v2118_v22  ;;  %v2607_v22 = vrot.slane %v2474_v21, %v3759_v2 }
 0x6b3   :  { %3426 = vpow2.f32 %v2929_v23  ;;  %v2611_v23 = vrot.slane %v2474_v21, %v3764_v4 }
 0x6bd   :  { %v3427_v24 = vpop.eup %3426 }
 0x6be   :  { %v2122_v25 = vadd.f32 1.0, %v3427_v24 }
 0x6c0   :  { %3428 = vrcp.f32 %v2122_v25 }
 0x6ca   :  { %v3429_v31 = vpop.eup %3428 }
 0x6cb   :  { %v2125_v37 = vmul.f32 %v3429_v31, %v2095_v28  ;;  %v2132_v46 = vrot.slane %v3429_v31, 1 }
 0x6cd   :  { %v2129_v43 = vadd.f32 %v2127_v40, %v2125_v37  ;;  %v2134_v49 = vsub.f32 1.0, %v2132_v46  ;;  %v2136_v54 = vmul.f32 %v2132_v46, %v3978_v60 }
 0x6cf   :  { %3430 = vtanh.f32 %v2129_v43 }
 0x6d9   :  { %v3431_v52 = vpop.eup %3430 }
 0x6da   :  { %v2135_v53 = vmul.f32 %v3431_v52, %v2134_v49 }
 0x6dc   :  { %v4019_v55 = vadd.f32 %v2136_v54, %v2135_v53 }
 0x6de   :  { %2138 = vst [vmem:[#allocation11 + $0x5] sm:$0x1] %v4019_v55  ;;  %v2141_v56 = vpack.c.bf16 %v4019_v55, %v4019_v55 }
 0x6e0   :  { %2352 = vmatmul.mubr.bf16.vlgmr.msra.gmra.mrb[28].mxu0 %v2141_v56  ;;  %3218 = vmatmul.mubr.bf16.vlgmr.msra.gmra.mrb[28].mxu1 %v2141_v56 }
 0x6e1   :  { %2620 = vmatpush1.bf16.msra.mxu0 %v3873_v59  ;;  %2651 = vmatprep.mubr.bf16.mxu0 %v3569_v1  ;;  %v3388_v1 = vld [vmem:[#allocation9 + $0x8] ss:$12 sps:$4 sm:$0xff]   ;;  %v3389_v59 = vld [vmem:[#allocation9 + $0x20] ss:$12 sps:$4 sm:$0xff]  }
 0x6e2   :  { %2621 = vmatprep.subr.bf16.mxu0 %v3877_v61  ;;  %3237 = vmatprep.mubr.msk.bf16.mxu1 %vm3570_vm0, %v3568_v0  ;;  %v3390_v61 = vld [vmem:[#allocation9 + $0x38] ss:$12 sps:$4 sm:$0xff]  }
 0x6e3   :  { %3222 = vmatpush3.bf16.msra.mxu1 %v3388_v1 }
 0x6e4   :  { %3223 = vmatprep.subr.bf16.mxu1 %v3568_v0 }
 0x6e5   :  { %2622 = vmatpush1.bf16.msra.mxu0 %v3880_v62  ;;  %v3391_v62 = vld [vmem:[#allocation9 + $0x50] ss:$12 sps:$4 sm:$0xff]  }
 0x6e6   :  { %2623 = vmatprep.subr.bf16.mxu0 %v3884_v3  ;;  %v3392_v3 = vld [vmem:[#allocation9 + $0x68] ss:$12 sps:$4 sm:$0xff]  }
 0x6e7   :  { %3224 = vmatpush3.bf16.msra.mxu1 %v3389_v59  ;;  %v2615_v59 = vrot.slane %v2474_v21, %v3766_v5 }
 0x6e8   :  { %3225 = vmatprep.subr.bf16.mxu1 %v3568_v0 }
 0x6e9   :  { %2624 = vmatpush1.bf16.msra.mxu0 %v3887_v6  ;;  %v3393_v6 = vld [vmem:[#allocation9 + $0x80] ss:$12 sps:$4 sm:$0xff]  }
 0x6ea   :  { %2625 = vmatprep.subr.bf16.mxu0 %v3891_v8  ;;  %v3394_v8 = vld [vmem:[#allocation9 + $0x98] ss:$12 sps:$4 sm:$0xff]  }
 0x6eb   :  { %3226 = vmatpush3.bf16.msra.mxu1 %v3390_v61 }
 0x6ec   :  { %3227 = vmatprep.subr.bf16.mxu1 %v3568_v0 }
 0x6ed   :  { %2626 = vmatpush1.bf16.msra.mxu0 %v3894_v9  ;;  %v3395_v9 = vld [vmem:[#allocation9 + $0xb0] ss:$12 sps:$4 sm:$0xff]  }
 0x6ee   :  { %2627 = vmatprep.subr.bf16.mxu0 %v3900_v12 }
 0x6ef   :  { %3228 = vmatpush3.bf16.msra.mxu1 %v3391_v62 }
 0x6f0   :  { %3229 = vmatprep.subr.bf16.mxu1 %v3568_v0 }
 0x6f1   :  { %2628 = vmatpush1.bf16.msra.mxu0 %v3898_v11  ;;  %v2174_v11 = vld [vmem:[%s4083_s5] sm:$0x7]  ;;  %s3572_s5 = smov [#allocation11]  }
 0x6f2   :  { %2629 = vmatprep.subr.bf16.mxu0 %v3903_v15  ;;  %v2307_v12 = vrot.slane %v2174_v11, %v3759_v2  ;;  %v2311_v15 = vrot.slane %v2174_v11, %v3764_v4  ;;  %v2315_v44 = vrot.slane %v2174_v11, %v3766_v5  ;;  %s2745_s11 = sshll.u32 %s3572_s5, 4  ;;  %s2746_s11 = int_to_ptr.vmem [resolvable:$true] %s2745_s11 }
 0x6f3   :  { %3230 = vmatpush3.bf16.msra.mxu1 %v3392_v3  ;;  %s3532_s12 = scalar_lea.vmem %s2746_s11, 128  ;;  %p3537_p5 = scmp.lt.s32.totalorder %s2746_s11, %s2746_s11 }
 0x6f4   :  { %3231 = vmatprep.subr.bf16.mxu1 %v3568_v0  ;;  %p3533_p4 = scmp.ne.s32.totalorder %s2746_s11, %s3532_s12  ;;  %p3538_p6 = scmp.lt.s32.totalorder %s3532_s12, %s3532_s12 }
 0x6f5   :  { %2630 = vmatpush1.bf16.msra.mxu0 %v3907_v29 }
 0x6f6   :  { %2631 = vmatprep.subr.bf16.mxu0 %v3911_v32  ;;  %p3539_p7 = por %p3538_p6, %p3537_p5 }
 0x6f7   :  { %3232 = vmatpush3.bf16.msra.mxu1 %v3393_v6 }
 0x6f8   :  { %3233 = vmatprep.subr.bf16.mxu1 %v3568_v0  ;;  %p3540_p8 = pnand %p3539_p7, %p3533_p4 }
 0x6f9   :  { %2632 = vmatpush1.bf16.msra.mxu0 %v3914_v33 }
 0x6fa   :  { %2633 = vmatprep.subr.bf16.mxu0 %v3918_v36 }
 0x6fb   :  { %3234 = vmatpush3.bf16.msra.mxu1 %v3394_v8 }
 0x6fc   :  { %3235 = vmatprep.subr.bf16.mxu1 %v3568_v0 }
 0x6fd   :  { %2634 = vmatpush1.bf16.msra.mxu0 %v3921_v38 }
 0x6ff   :  { %3236 = vmatpush3.bf16.msra.mxu1 %v3395_v9 }
 0x7b3   :  { %v2353_v29 = vpop.f32.mrb[28].mxu0  ;;  %v2394_v32 = vpop.f32.mrb[28].mxu1 }
 0x7b4   :  { %v2354_v33 = vadd.f32 %v2353_v29, %v2307_v12  ;;  %v2355_v36 = vpop.f32.mrb[29].mxu0  ;;  %v3219_v38 = vpop.f32.mrb[29].mxu1  ;;  %v2395_v45 = vadd.f32 %v2394_v32, %v2315_v44 }
 0x7b5   :  { %v2356_v60 = vadd.f32 %v2355_v36, %v2311_v15  ;;  %v2357_v57 = vpop.f32.mrb[30].mxu0  ;;  %v2397_v63 = vpop.f32.mrb[30].mxu1 }
 0x7b6   :  { %v2358_v7 = vpop.f32.mrb[31].mxu0  ;;  %v3220_v10 = vpop.f32.mrb[31].mxu1 }
 0x7b7   :  { %v2402_v0 = vcombine.low %v2354_v33, %v2356_v60 }
 0x7b9   :  { %v2409_v13 = vrot.slane %v2402_v0, %v3776_v35 }
 0x7bb   :  { %v2416_v30 = vrot.slane %v2409_v13, %v3776_v35 }
 0x7bd   :  { %v2418_v34 = vadd.f32 %v2416_v30, %v2140_v58 }
 0x7bf   :  { %v2954_v39 = vmul.f32 -1.442695, %v2418_v34 }
 0x7c1   :  { %3432 = vpow2.f32 %v2954_v39 }
 0x7cb   :  { %v3433_v41 = vpop.eup %3432 }
 0x7cc   :  { %v2422_v42 = vadd.f32 1.0, %v3433_v41 }
 0x7ce   :  { %3434 = vrcp.f32 %v2422_v42 }
 0x7d8   :  { %v3435_v47 = vpop.eup %3434 }
 0x7d9   :  { %v2425_v48 = vmul.f32 %v3435_v47, %v2395_v45  ;;  %v2432_v51 = vrot.slane %v3435_v47, 1 }
 0x7db   :  { %v2429_v14 = vadd.f32 %v2427_v50, %v2425_v48  ;;  %v2434_v16 = vsub.f32 1.0, %v2432_v51  ;;  %v2436_v19 = vmul.f32 %v2432_v51, %v4019_v55  ;;  %v2440_v55 = vld [vmem:[#allocation2 + $0x7] ss:$8 sm:$0x7] }
 0x7dc   :  { %v2727_v6 = vrot.slane %v2440_v55, 2 }
 0x7dd   :  { %3436 = vtanh.f32 %v2429_v14 }
 0x7e7   :  { %v3437_v17 = vpop.eup %3436 }
 0x7e8   :  { %v2435_v18 = vmul.f32 %v3437_v17, %v2434_v16 }
 0x7ea   :  { %v2437_v20 = vadd.f32 %v2436_v19, %v2435_v18 }
 0x7ec   :  { %2438 = vst [vmem:[#allocation11 + $0x6] sm:$0x1] %v2437_v20  ;;  %v2441_v27 = vpack.c.bf16 %v2437_v20, %v2437_v20 }
 0x7ee   :  { %2652 = vmatmul.mubr.bf16.vlgmr.msra.gmra.mrb[32].mxu0 %v2441_v27  ;;  %3238 = vmatmul.mubr.bf16.vlgmr.msra.gmra.mrb[32].mxu1 %v2441_v27 }
 0x8c1   :  { %v2653_v24 = vpop.f32.mrb[32].mxu0  ;;  %v2694_v25 = vpop.f32.mrb[32].mxu1 }
 0x8c2   :  { %v2654_v26 = vadd.f32 %v2653_v24, %v2607_v22  ;;  %v2655_v28 = vpop.f32.mrb[33].mxu0  ;;  %v3239_v31 = vpop.f32.mrb[33].mxu1  ;;  %v2695_v61 = vadd.f32 %v2694_v25, %v2615_v59 }
 0x8c3   :  { %v2656_v37 = vadd.f32 %v2655_v28, %v2611_v23  ;;  %v2657_v40 = vpop.f32.mrb[34].mxu0  ;;  %v2697_v43 = vpop.f32.mrb[34].mxu1 }
 0x8c4   :  { %v2658_v46 = vpop.f32.mrb[35].mxu0  ;;  %v3240_v49 = vpop.f32.mrb[35].mxu1 }
 0x8c5   :  { %v2702_v52 = vcombine.low %v2654_v26, %v2656_v37 }
 0x8c7   :  { %v2709_v53 = vrot.slane %v2702_v52, %v3776_v35 }
 0x8c9   :  { %v2716_v54 = vrot.slane %v2709_v53, %v3776_v35 }
 0x8cb   :  { %v2718_v56 = vadd.f32 %v2716_v54, %v2440_v55 }
 0x8cd   :  { %v2979_v2 = vmul.f32 -1.442695, %v2718_v56 }
 0x8cf   :  { %3438 = vpow2.f32 %v2979_v2 }
 0x8d9   :  { %v3439_v4 = vpop.eup %3438 }
 0x8da   :  { %v2722_v1 = vadd.f32 1.0, %v3439_v4 }
 0x8dc   :  { %3440 = vrcp.f32 %v2722_v1 }
 0x8e6   :  { %v3441_v62 = vpop.eup %3440 }
 0x8e7   :  { %v2725_v3 = vmul.f32 %v3441_v62, %v2695_v61  ;;  %v2732_v9 = vrot.slane %v3441_v62, 1 }
 0x8e9   :  { %v2729_v8 = vadd.f32 %v2727_v6, %v2725_v3  ;;  %v2734_v11 = vsub.f32 1.0, %v2732_v9  ;;  %v2736_v15 = vmul.f32 %v2732_v9, %v2437_v20 }
 0x8eb   :  { %3442 = vtanh.f32 %v2729_v8 }
 0x8f5   :  { %v3443_v12 = vpop.eup %3442 }
 0x8f6   :  { %v2735_v35 = vmul.f32 %v3443_v12, %v2734_v11 }
 0x8f8   :  { %v2737_v29 = vadd.f32 %v2736_v15, %v2735_v35 }
 0x8fa   :  { %2738 = vst [vmem:[#allocation11 + $0x7] sm:$0x1] %v2737_v29 }
 0x8fb   :  { %3543 = shalt.err (!%p3540_p8)
}
 0x8fc   :  { %s3544_s15 = scalar_lea.hbm %s4084_s6, 128 }
 0x8fd   :  { %p3545_p9 = scmp.ne.s32.totalorder %s4084_s6, %s3544_s15  ;;  %p3548_p10 = scmp.lt.u32.totalorder %s3544_s15, %s4084_s6 }
 0x8ff   :  { %p3550_p11 = pnand %p3548_p10, %p3545_p9 }
 0x901   :  { %3553 = shalt.err (!%p3550_p11)
}
 0x902   :  { %2748 = dma.vmem_to_hbm [thread:$0]  %s2746_s11, 128, %s4084_s6, [#allocation5]  }
 0x903   :  { %3560 = dma.done.wait [#allocation5], 128  }
 0x904   :  { %3561 = vsyncadd [#allocation5], 4294967168 }
 0x905   :  { %2752 = vsyncpa [#allocation4], 1 }
 0x906   :  { %2753 = vsyncpa [#allocation7], 1 }
 0x907   :  { %2754 = vsyncpa [#allocation10], 1 }
 0x908   :  { %2755 = vsyncpa [#allocation5], 1 }

</bundles_post_ra>
